<compile_context>
chip_gen: v5e
topology: v5e:2x2
jax: 0.10.0
libtpu: 0.0.40
codegen_flags: <defaults>
</compile_context>

<pallas_src>
import jax
import jax.numpy as jnp
from jax.experimental import pallas as pl
from jax.experimental.pallas import tpu as pltpu

LN_EPS = 1e-5  # torch.nn.LayerNorm default


# ---------------------------------------------------------------------------
# Kernels
# ---------------------------------------------------------------------------
def _silu_ln(h, gamma, beta):
    """SiLU + LayerNorm over the last (embed) dim, single-pass stats, f32."""
    h = h * jax.nn.sigmoid(h)                       # SiLU (EUP)
    m1 = jnp.mean(h, axis=-1, keepdims=True)
    m2 = jnp.mean(h * h, axis=-1, keepdims=True)
    var = jnp.maximum(m2 - m1 * m1, 0.0)            # biased var (torch LN)
    return (h - m1) * jax.lax.rsqrt(var + LN_EPS) * gamma + beta


def edge_kernel(n2e_ref, e_ref, w_ref, g_ref, b_ref, add_ref, eout_ref):
    # Fused K=2D matmul: [u+v | e] @ [W_S2E ; W_E2E], bf16 in, f32 accumulate.
    x = jnp.concatenate([n2e_ref[...], e_ref[...].astype(jnp.bfloat16)], axis=-1)
    h = jnp.dot(x, w_ref[...], preferred_element_type=jnp.float32)
    h = _silu_ln(h, g_ref[...], b_ref[...])          # activator1
    add_ref[...] = h.astype(add_ref.dtype)           # edges['add_feat'] (bf16)
    eout_ref[...] = e_ref[...] + h                    # edges['feat'] += add_feat


def node_kernel(agg_ref, t_ref, w_ref, g_ref, b_ref, tout_ref):
    # Fused K=2D matmul: [mean(add_feat) | tgt] @ [W_E2T ; W_T2T].
    x = jnp.concatenate([agg_ref[...], t_ref[...].astype(jnp.bfloat16)], axis=-1)
    h = jnp.dot(x, w_ref[...], preferred_element_type=jnp.float32)
    h = _silu_ln(h, g_ref[...], b_ref[...])          # activator2
    tout_ref[...] = t_ref[...] + h                    # nodes[tgt]['feat'] += add_feat


def src_kernel(s_ref, w_ref, g_ref, b_ref, sout_ref):
    # Optional S2S branch: src + activator3(S2S(src)).
    h = jnp.dot(s_ref[...].astype(jnp.bfloat16), w_ref[...],
                preferred_element_type=jnp.float32)
    h = _silu_ln(h, g_ref[...], b_ref[...])
    sout_ref[...] = s_ref[...] + h


# ---------------------------------------------------------------------------
# Spec / tiling helpers
# ---------------------------------------------------------------------------
def _round_up(x, m):
    return (x + m - 1) // m * m


def _choose_tile(n, max_tile):
    """Pick a row tile (multiple of 16, bf16-friendly) and the padded row count."""
    max_tile = _round_up(max_tile, 16)
    n16 = _round_up(max(n, 16), 16)
    tile = min(max_tile, n16)
    return tile, _round_up(n16, tile)


def _pad_rows(x, n_rows):
    pad = n_rows - x.shape[0]
    return x if pad == 0 else jnp.pad(x, ((0, pad), (0, 0)))


def _tiled(tile, d):
    return pl.BlockSpec((tile, d), lambda i: (i, 0))


def _resident(shape):
    nd = len(shape)
    return pl.BlockSpec(shape, lambda i: (0,) * nd)


# ---------------------------------------------------------------------------
# Wrapper (graph plumbing in XLA glue; hot path in Pallas)
# ---------------------------------------------------------------------------
def lora_n2e2n_forward(src_feat, tgt_feat, edge_feat, src_idx, dst_idx, params,
                       do_source_update=False, max_rows_per_tile=1024):
    E, D = edge_feat.shape
    n_tgt = tgt_feat.shape[0]
    n_src = src_feat.shape[0]

    # glue: fn.u_add_v endpoint gather (data-dependent row gather).
    # TODO(synk): fuse this gather into edge_kernel (scalar-prefetched indices +
    # in-kernel DMA gather) to remove one [E, D] HBM round trip.
    n2e = (src_feat[src_idx] + tgt_feat[dst_idx]).astype(jnp.bfloat16)

    # ----------------------- edge pass: row-tiled over E --------------------
    te, e_pad = _choose_tile(E, max_rows_per_tile)
    add_p, edge_new_p = pl.pallas_call(
        edge_kernel,
        grid=(e_pad // te,),
        in_specs=[
            _tiled(te, D),               # node_to_edge (bf16)
            _tiled(te, D),               # edge feat    (f32)
            _resident((2 * D, D)),       # [W_S2E ; W_E2E] (bf16, resident)
            _resident((1, D)),           # ln1 gamma
            _resident((1, D)),           # ln1 beta
        ],
        out_specs=(_tiled(te, D), _tiled(te, D)),
        out_shape=(jax.ShapeDtypeStruct((e_pad, D), jnp.bfloat16),   # add_feat
                   jax.ShapeDtypeStruct((e_pad, D), jnp.float32)),   # new edge feat
        input_output_aliases={1: 1},     # edge-feat residual written in place
        compiler_params=pltpu.CompilerParams(dimension_semantics=("parallel",)),
    )(_pad_rows(n2e, e_pad), _pad_rows(edge_feat, e_pad),
      params["W_edge"], params["ln1_g"], params["ln1_b"])
    add_feat = add_p[:E]
    edge_feat_new = edge_new_p[:E]

    # glue: update_all(copy_e, mean) -> segment mean (scatter stays in XLA);
    # replaces the dense one-hot incidence matmul of the previous version.
    # TODO(synk): 'coef' (weighted fn.sum) branch of the module not implemented.
    seg = jax.ops.segment_sum(add_feat.astype(jnp.float32), dst_idx,
                              num_segments=n_tgt)
    deg = jax.ops.segment_sum(jnp.ones((E,), jnp.float32), dst_idx,
                              num_segments=n_tgt)
    agg = (seg * (1.0 / jnp.maximum(deg, 1.0))[:, None]).astype(jnp.bfloat16)

    # ------------------- target-node pass: row-tiled over N_tgt -------------
    tn, nt_pad = _choose_tile(n_tgt, max_rows_per_tile)
    tgt_new_p = pl.pallas_call(
        node_kernel,
        grid=(nt_pad // tn,),
        in_specs=[
            _tiled(tn, D),               # aggregated add_feat (bf16)
            _tiled(tn, D),               # tgt feat (f32)
            _resident((2 * D, D)),       # [W_E2T ; W_T2T]
            _resident((1, D)),
            _resident((1, D)),
        ],
        out_specs=_tiled(tn, D),
        out_shape=jax.ShapeDtypeStruct((nt_pad, D), jnp.float32),
        input_output_aliases={1: 0},
        compiler_params=pltpu.CompilerParams(dimension_semantics=("parallel",)),
    )(_pad_rows(agg, nt_pad), _pad_rows(tgt_feat, nt_pad),
      params["W_node"], params["ln2_g"], params["ln2_b"])
    tgt_feat_new = tgt_new_p[:n_tgt]

    # ----------------------- optional source-node pass ----------------------
    src_feat_new = src_feat
    if do_source_update:
        ts, ns_pad = _choose_tile(n_src, max_rows_per_tile)
        src_new_p = pl.pallas_call(
            src_kernel,
            grid=(ns_pad // ts,),
            in_specs=[
                _tiled(ts, D),
                _resident((D, D)),       # W_S2S (bf16)
                _resident((1, D)),
                _resident((1, D)),
            ],
            out_specs=_tiled(ts, D),
            out_shape=jax.ShapeDtypeStruct((ns_pad, D), jnp.float32),
            input_output_aliases={0: 0},
            compiler_params=pltpu.CompilerParams(dimension_semantics=("parallel",)),
        )(_pad_rows(src_feat, ns_pad),
          params["W_S2S"], params["ln3_g"], params["ln3_b"])
        src_feat_new = src_new_p[:n_src]

    return src_feat_new, tgt_feat_new, edge_feat_new


# ---------------------------------------------------------------------------
# Pure-JAX reference (f32, optionally emulating the kernel's bf16 matmul path)
# ---------------------------------------------------------------------------
def reference_forward(src_feat, tgt_feat, edge_feat, src_idx, dst_idx, params,
                      do_source_update=False, emulate_bf16=False):
    q = (lambda x: x.astype(jnp.bfloat16).astype(jnp.float32)) if emulate_bf16 \
        else (lambda x: x)

    def silu_ln(h, g, b):
        h = h * jax.nn.sigmoid(h)
        mu = jnp.mean(h, axis=-1, keepdims=True)
        var = jnp.mean(jnp.square(h - mu), axis=-1, keepdims=True)
        return (h - mu) * jax.lax.rsqrt(var + LN_EPS) * g + b

    n_tgt = tgt_feat.shape[0]
    E = edge_feat.shape[0]
    n2e = src_feat[src_idx] + tgt_feat[dst_idx]
    h1 = q(n2e) @ q(params["W_S2E_t"]) + q(edge_feat) @ q(params["W_E2E_t"])
    add = silu_ln(h1, params["ln1_g"], params["ln1_b"])
    edge_new = edge_feat + add
    seg = jax.ops.segment_sum(q(add), dst_idx, num_segments=n_tgt)
    deg = jax.ops.segment_sum(jnp.ones((E,), jnp.float32), dst_idx,
                              num_segments=n_tgt)
    agg = seg / jnp.maximum(deg, 1.0)[:, None]
    h2 = q(agg) @ q(params["W_E2T_t"]) + q(tgt_feat) @ q(params["W_T2T_t"])
    tgt_new = tgt_feat + silu_ln(h2, params["ln2_g"], params["ln2_b"])
    src_new = src_feat
    if do_source_update:
        h3 = q(src_feat) @ q(params["W_S2S_t"])
        src_new = src_feat + silu_ln(h3, params["ln3_g"], params["ln3_b"])
    return src_new, tgt_new, edge_new


# ---------------------------------------------------------------------------
# Main
# ---------------------------------------------------------------------------
if __name__ == "__main__":
    D = 128                      # embed_dim (module default; TPU lane width)
    N_SRC, N_TGT, E = 40, 48, 200
    TILE_ROWS = 64               # small tile so the edge pass exercises a multi-step grid
    DO_SOURCE_UPDATE = True

    key = jax.random.PRNGKey(0)
    keys = jax.random.split(key, 16)

    def linear_w_t(k):
        # torch.nn.Linear default init (uniform +-1/sqrt(in)), stored transposed.
        bound = 1.0 / jnp.sqrt(jnp.float32(D))
        return jax.random.uniform(k, (D, D), jnp.float32, -bound, bound)

    w_s2e = linear_w_t(keys[0])   # STE2E_S2E  (STE2E_T2E is None in this subclass)
    w_e2e = linear_w_t(keys[1])   # STE2E_E2E
    w_e2t = linear_w_t(keys[2])   # ET2T_E2T
    w_t2t = linear_w_t(keys[3])   # ET2T_T2T
    w_s2s = linear_w_t(keys[4])   # S2S (only if do_source_update)

    def ln_params(kg, kb):
        g = 1.0 + 0.1 * jax.random.normal(kg, (1, D), jnp.float32)
        b = 0.1 * jax.random.normal(kb, (1, D), jnp.float32)
        return g, b

    g1, b1 = ln_params(keys[10], keys[11])
    g2, b2 = ln_params(keys[12], keys[13])
    g3, b3 = ln_params(keys[14], keys[15])

    params = {
        # fused K=2D weights for the MXU, stored bf16
        "W_edge": jnp.concatenate([w_s2e, w_e2e], axis=0).astype(jnp.bfloat16),
        "W_node": jnp.concatenate([w_e2t, w_t2t], axis=0).astype(jnp.bfloat16),
        "W_S2S": w_s2s.astype(jnp.bfloat16),
        "ln1_g": g1, "ln1_b": b1,
        "ln2_g": g2, "ln2_b": b2,
        "ln3_g": g3, "ln3_b": b3,
    }
    ref_params = {
        "W_S2E_t": w_s2e, "W_E2E_t": w_e2e, "W_E2T_t": w_e2t,
        "W_T2T_t": w_t2t, "W_S2S_t": w_s2s,
        "ln1_g": g1, "ln1_b": b1, "ln2_g": g2, "ln2_b": b2,
        "ln3_g": g3, "ln3_b": b3,
    }

    src_feat = jax.random.normal(keys[5], (N_SRC, D), jnp.float32)
    tgt_feat = jax.random.normal(keys[6], (N_TGT, D), jnp.float32)
    edge_feat = jax.random.normal(keys[7], (E, D), jnp.float32)
    src_idx = jax.random.randint(keys[8], (E,), 0, N_SRC, jnp.int32)
    dst_idx = jax.random.randint(keys[9], (E,), 0, N_TGT, jnp.int32)

    fwd = jax.jit(lora_n2e2n_forward,
                  static_argnames=("do_source_update", "max_rows_per_tile"))
    out = fwd(src_feat, tgt_feat, edge_feat, src_idx, dst_idx, params,
              do_source_update=DO_SOURCE_UPDATE, max_rows_per_tile=TILE_ROWS)
    out = jax.block_until_ready(out)

    # Tight check vs a reference that emulates the kernel's bf16 matmul inputs.
    ref_bf16 = reference_forward(src_feat, tgt_feat, edge_feat, src_idx, dst_idx,
                                 ref_params, do_source_update=DO_SOURCE_UPDATE,
                                 emulate_bf16=True)
    for o, r in zip(out, ref_bf16):
        assert jnp.allclose(o, r, atol=2e-3, rtol=2e-3), \
            "mismatch vs bf16-emulating reference"

    # Looser check vs the pure-f32 reference (expected bf16-MXU precision loss).
    ref_f32 = reference_forward(src_feat, tgt_feat, edge_feat, src_idx, dst_idx,
                                ref_params, do_source_update=DO_SOURCE_UPDATE,
                                emulate_bf16=False)
    for o, r in zip(out, ref_f32):
        assert jnp.allclose(o, r, atol=3e-2, rtol=3e-2), "mismatch vs f32 reference"

    print("KERNEL_OK")
</pallas_src>

<mosaic_0001>
module attributes {stable_mosaic.version = 11 : i64} {
  func.func @edge_kernel(%arg0: i32, %arg1: memref<64x128xbf16, #tpu.memory_space<vmem>>, %arg2: memref<64x128xf32, #tpu.memory_space<vmem>>, %arg3: memref<256x128xbf16, #tpu.memory_space<vmem>>, %arg4: memref<1x128xf32, #tpu.memory_space<vmem>>, %arg5: memref<1x128xf32, #tpu.memory_space<vmem>>, %arg6: memref<64x128xbf16, #tpu.memory_space<vmem>>, %arg7: memref<64x128xf32, #tpu.memory_space<vmem>>) attributes {dimension_semantics = [#tpu.dimension_semantics<parallel>], iteration_bounds = array<i64: 4>, scalar_prefetch = 0 : i64, scratch_operands = 0 : i64, tpu.core_type = #tpu.core_type<tc>, window_params = [{transform_indices = @transform_0, window_bounds = array<i64: 64, 128>}, {transform_indices = @transform_1, window_bounds = array<i64: 64, 128>}, {pipeline_mode = #tpu.pipeline_mode<synchronous>, transform_indices = @transform_2, window_bounds = array<i64: 256, 128>}, {pipeline_mode = #tpu.pipeline_mode<synchronous>, transform_indices = @transform_3, window_bounds = array<i64: 1, 128>}, {pipeline_mode = #tpu.pipeline_mode<synchronous>, transform_indices = @transform_4, window_bounds = array<i64: 1, 128>}, {transform_indices = @transform_5, window_bounds = array<i64: 64, 128>}, {transform_indices = @transform_6, window_bounds = array<i64: 64, 128>}]} {
    %c0 = arith.constant 0 : index
    %c0_0 = arith.constant 0 : index
    %0 = vector.load %arg1[%c0, %c0_0] : memref<64x128xbf16, #tpu.memory_space<vmem>>, vector<64x128xbf16>
    %c0_1 = arith.constant 0 : index
    %c0_2 = arith.constant 0 : index
    %1 = vector.load %arg2[%c0_1, %c0_2] : memref<64x128xf32, #tpu.memory_space<vmem>>, vector<64x128xf32>
    %2 = arith.truncf %1 : vector<64x128xf32> to vector<64x128xbf16>
    %3 = tpu.concatenate %0, %2 in 1 : vector<64x128xbf16>, vector<64x128xbf16> -> vector<64x256xbf16>
    %c0_3 = arith.constant 0 : index
    %c0_4 = arith.constant 0 : index
    %4 = vector.load %arg3[%c0_3, %c0_4] : memref<256x128xbf16, #tpu.memory_space<vmem>>, vector<256x128xbf16>
    %cst = arith.constant dense<0.000000e+00> : vector<64x128xf32>
    %5 = tpu.matmul %3, %4, %cst {dimension_numbers = #tpu.dot_dimension_numbers<[1], [0], [0], [1], [0, 0, 1, 1], [], []>} : vector<64x256xbf16>, vector<256x128xbf16>, vector<64x128xf32> -> vector<64x128xf32>
    %c0_5 = arith.constant 0 : index
    %c0_6 = arith.constant 0 : index
    %6 = vector.load %arg4[%c0_5, %c0_6] : memref<1x128xf32, #tpu.memory_space<vmem>>, vector<1x128xf32>
    %c0_7 = arith.constant 0 : index
    %c0_8 = arith.constant 0 : index
    %7 = vector.load %arg5[%c0_7, %c0_8] : memref<1x128xf32, #tpu.memory_space<vmem>>, vector<1x128xf32>
    %8 = arith.negf %5 : vector<64x128xf32>
    %9 = math.exp %8 : vector<64x128xf32>
    %cst_9 = arith.constant 1.000000e+00 : f32
    %10 = vector.broadcast %cst_9 : f32 to vector<64x128xf32>
    %11 = arith.addf %10, %9 : vector<64x128xf32>
    %12 = arith.divf %10, %11 : vector<64x128xf32>
    %13 = arith.mulf %5, %12 : vector<64x128xf32>
    %cst_10 = arith.constant dense<0.000000e+00> : vector<64xf32>
    %14 = vector.multi_reduction <add>, %13, %cst_10 [1] : vector<64x128xf32> to vector<64xf32>
    %15 = vector.shape_cast %14 : vector<64xf32> to vector<64x1xf32>
    %cst_11 = arith.constant 1.280000e+02 : f32
    %16 = vector.broadcast %cst_11 : f32 to vector<64x1xf32>
    %17 = arith.divf %15, %16 : vector<64x1xf32>
    %18 = arith.mulf %13, %13 : vector<64x128xf32>
    %cst_12 = arith.constant dense<0.000000e+00> : vector<64xf32>
    %19 = vector.multi_reduction <add>, %18, %cst_12 [1] : vector<64x128xf32> to vector<64xf32>
    %20 = vector.shape_cast %19 : vector<64xf32> to vector<64x1xf32>
    %cst_13 = arith.constant 1.280000e+02 : f32
    %21 = vector.broadcast %cst_13 : f32 to vector<64x1xf32>
    %22 = arith.divf %20, %21 : vector<64x1xf32>
    %23 = arith.mulf %17, %17 : vector<64x1xf32>
    %24 = arith.subf %22, %23 : vector<64x1xf32>
    %cst_14 = arith.constant 0.000000e+00 : f32
    %25 = vector.broadcast %cst_14 : f32 to vector<64x1xf32>
    %26 = arith.maximumf %24, %25 : vector<64x1xf32>
    %27 = vector.broadcast %17 : vector<64x1xf32> to vector<64x128xf32>
    %28 = arith.subf %13, %27 : vector<64x128xf32>
    %cst_15 = arith.constant 9.99999974E-6 : f32
    %29 = vector.broadcast %cst_15 : f32 to vector<64x1xf32>
    %30 = arith.addf %26, %29 : vector<64x1xf32>
    %31 = math.rsqrt %30 : vector<64x1xf32>
    %32 = vector.broadcast %31 : vector<64x1xf32> to vector<64x128xf32>
    %33 = arith.mulf %28, %32 : vector<64x128xf32>
    %34 = vector.broadcast %6 : vector<1x128xf32> to vector<64x128xf32>
    %35 = arith.mulf %33, %34 : vector<64x128xf32>
    %36 = vector.broadcast %7 : vector<1x128xf32> to vector<64x128xf32>
    %37 = arith.addf %35, %36 : vector<64x128xf32>
    %38 = arith.truncf %37 : vector<64x128xf32> to vector<64x128xbf16>
    %c0_16 = arith.constant 0 : index
    %c0_17 = arith.constant 0 : index
    %39 = vector.load %arg6[%c0_16, %c0_17] : memref<64x128xbf16, #tpu.memory_space<vmem>>, vector<64x128xbf16>
    tpu.vector_store %arg6[%c0_16, %c0_17], %38 {strides = array<i32>} : memref<64x128xbf16, #tpu.memory_space<vmem>>, vector<64x128xbf16>,
    %c0_18 = arith.constant 0 : index
    %c0_19 = arith.constant 0 : index
    %40 = vector.load %arg2[%c0_18, %c0_19] : memref<64x128xf32, #tpu.memory_space<vmem>>, vector<64x128xf32>
    %41 = arith.addf %40, %37 : vector<64x128xf32>
    %c0_20 = arith.constant 0 : index
    %c0_21 = arith.constant 0 : index
    %42 = vector.load %arg7[%c0_20, %c0_21] : memref<64x128xf32, #tpu.memory_space<vmem>>, vector<64x128xf32>
    tpu.vector_store %arg7[%c0_20, %c0_21], %41 {strides = array<i32>} : memref<64x128xf32, #tpu.memory_space<vmem>>, vector<64x128xf32>,
    return
  }
  func.func @transform_0(%arg0: i32) -> (i32, i32) {
    %c0_i32 = arith.constant 0 : i32
    %c0_i32_0 = arith.constant 0 : i32
    return %arg0, %c0_i32 : i32, i32
  }
  func.func @transform_1(%arg0: i32) -> (i32, i32) {
    %c0_i32 = arith.constant 0 : i32
    %c0_i32_0 = arith.constant 0 : i32
    return %arg0, %c0_i32 : i32, i32
  }
  func.func @transform_2(%arg0: i32) -> (i32, i32) {
    %c0_i32 = arith.constant 0 : i32
    %c0_i32_0 = arith.constant 0 : i32
    %c0_i32_1 = arith.constant 0 : i32
    return %c0_i32, %c0_i32_0 : i32, i32
  }
  func.func @transform_3(%arg0: i32) -> (i32, i32) {
    %c0_i32 = arith.constant 0 : i32
    %c0_i32_0 = arith.constant 0 : i32
    %c0_i32_1 = arith.constant 0 : i32
    return %c0_i32, %c0_i32_0 : i32, i32
  }
  func.func @transform_4(%arg0: i32) -> (i32, i32) {
    %c0_i32 = arith.constant 0 : i32
    %c0_i32_0 = arith.constant 0 : i32
    %c0_i32_1 = arith.constant 0 : i32
    return %c0_i32, %c0_i32_0 : i32, i32
  }
  func.func @transform_5(%arg0: i32) -> (i32, i32) {
    %c0_i32 = arith.constant 0 : i32
    %c0_i32_0 = arith.constant 0 : i32
    return %arg0, %c0_i32 : i32, i32
  }
  func.func @transform_6(%arg0: i32) -> (i32, i32) {
    %c0_i32 = arith.constant 0 : i32
    %c0_i32_0 = arith.constant 0 : i32
    return %arg0, %c0_i32 : i32, i32
  }
}

module attributes {stable_mosaic.version = 11 : i64} {
  func.func @node_kernel(%arg0: i32, %arg1: memref<48x128xbf16, #tpu.memory_space<vmem>>, %arg2: memref<48x128xf32, #tpu.memory_space<vmem>>, %arg3: memref<256x128xbf16, #tpu.memory_space<vmem>>, %arg4: memref<1x128xf32, #tpu.memory_space<vmem>>, %arg5: memref<1x128xf32, #tpu.memory_space<vmem>>, %arg6: memref<48x128xf32, #tpu.memory_space<vmem>>) attributes {dimension_semantics = [#tpu.dimension_semantics<parallel>], iteration_bounds = array<i64: 1>, scalar_prefetch = 0 : i64, scratch_operands = 0 : i64, tpu.core_type = #tpu.core_type<tc>, window_params = [{transform_indices = @transform_0, window_bounds = array<i64: 48, 128>}, {transform_indices = @transform_1, window_bounds = array<i64: 48, 128>}, {pipeline_mode = #tpu.pipeline_mode<synchronous>, transform_indices = @transform_2, window_bounds = array<i64: 256, 128>}, {pipeline_mode = #tpu.pipeline_mode<synchronous>, transform_indices = @transform_3, window_bounds = array<i64: 1, 128>}, {pipeline_mode = #tpu.pipeline_mode<synchronous>, transform_indices = @transform_4, window_bounds = array<i64: 1, 128>}, {transform_indices = @transform_5, window_bounds = array<i64: 48, 128>}]} {
    %c0 = arith.constant 0 : index
    %c0_0 = arith.constant 0 : index
    %0 = vector.load %arg1[%c0, %c0_0] : memref<48x128xbf16, #tpu.memory_space<vmem>>, vector<48x128xbf16>
    %c0_1 = arith.constant 0 : index
    %c0_2 = arith.constant 0 : index
    %1 = vector.load %arg2[%c0_1, %c0_2] : memref<48x128xf32, #tpu.memory_space<vmem>>, vector<48x128xf32>
    %2 = arith.truncf %1 : vector<48x128xf32> to vector<48x128xbf16>
    %3 = tpu.concatenate %0, %2 in 1 : vector<48x128xbf16>, vector<48x128xbf16> -> vector<48x256xbf16>
    %c0_3 = arith.constant 0 : index
    %c0_4 = arith.constant 0 : index
    %4 = vector.load %arg3[%c0_3, %c0_4] : memref<256x128xbf16, #tpu.memory_space<vmem>>, vector<256x128xbf16>
    %cst = arith.constant dense<0.000000e+00> : vector<48x128xf32>
    %5 = tpu.matmul %3, %4, %cst {dimension_numbers = #tpu.dot_dimension_numbers<[1], [0], [0], [1], [0, 0, 1, 1], [], []>} : vector<48x256xbf16>, vector<256x128xbf16>, vector<48x128xf32> -> vector<48x128xf32>
    %c0_5 = arith.constant 0 : index
    %c0_6 = arith.constant 0 : index
    %6 = vector.load %arg4[%c0_5, %c0_6] : memref<1x128xf32, #tpu.memory_space<vmem>>, vector<1x128xf32>
    %c0_7 = arith.constant 0 : index
    %c0_8 = arith.constant 0 : index
    %7 = vector.load %arg5[%c0_7, %c0_8] : memref<1x128xf32, #tpu.memory_space<vmem>>, vector<1x128xf32>
    %8 = arith.negf %5 : vector<48x128xf32>
    %9 = math.exp %8 : vector<48x128xf32>
    %cst_9 = arith.constant 1.000000e+00 : f32
    %10 = vector.broadcast %cst_9 : f32 to vector<48x128xf32>
    %11 = arith.addf %10, %9 : vector<48x128xf32>
    %12 = arith.divf %10, %11 : vector<48x128xf32>
    %13 = arith.mulf %5, %12 : vector<48x128xf32>
    %cst_10 = arith.constant dense<0.000000e+00> : vector<48xf32>
    %14 = vector.multi_reduction <add>, %13, %cst_10 [1] : vector<48x128xf32> to vector<48xf32>
    %15 = vector.shape_cast %14 : vector<48xf32> to vector<48x1xf32>
    %cst_11 = arith.constant 1.280000e+02 : f32
    %16 = vector.broadcast %cst_11 : f32 to vector<48x1xf32>
    %17 = arith.divf %15, %16 : vector<48x1xf32>
    %18 = arith.mulf %13, %13 : vector<48x128xf32>
    %cst_12 = arith.constant dense<0.000000e+00> : vector<48xf32>
    %19 = vector.multi_reduction <add>, %18, %cst_12 [1] : vector<48x128xf32> to vector<48xf32>
    %20 = vector.shape_cast %19 : vector<48xf32> to vector<48x1xf32>
    %cst_13 = arith.constant 1.280000e+02 : f32
    %21 = vector.broadcast %cst_13 : f32 to vector<48x1xf32>
    %22 = arith.divf %20, %21 : vector<48x1xf32>
    %23 = arith.mulf %17, %17 : vector<48x1xf32>
    %24 = arith.subf %22, %23 : vector<48x1xf32>
    %cst_14 = arith.constant 0.000000e+00 : f32
    %25 = vector.broadcast %cst_14 : f32 to vector<48x1xf32>
    %26 = arith.maximumf %24, %25 : vector<48x1xf32>
    %27 = vector.broadcast %17 : vector<48x1xf32> to vector<48x128xf32>
    %28 = arith.subf %13, %27 : vector<48x128xf32>
    %cst_15 = arith.constant 9.99999974E-6 : f32
    %29 = vector.broadcast %cst_15 : f32 to vector<48x1xf32>
    %30 = arith.addf %26, %29 : vector<48x1xf32>
    %31 = math.rsqrt %30 : vector<48x1xf32>
    %32 = vector.broadcast %31 : vector<48x1xf32> to vector<48x128xf32>
    %33 = arith.mulf %28, %32 : vector<48x128xf32>
    %34 = vector.broadcast %6 : vector<1x128xf32> to vector<48x128xf32>
    %35 = arith.mulf %33, %34 : vector<48x128xf32>
    %36 = vector.broadcast %7 : vector<1x128xf32> to vector<48x128xf32>
    %37 = arith.addf %35, %36 : vector<48x128xf32>
    %c0_16 = arith.constant 0 : index
    %c0_17 = arith.constant 0 : index
    %38 = vector.load %arg2[%c0_16, %c0_17] : memref<48x128xf32, #tpu.memory_space<vmem>>, vector<48x128xf32>
    %39 = arith.addf %38, %37 : vector<48x128xf32>
    %c0_18 = arith.constant 0 : index
    %c0_19 = arith.constant 0 : index
    %40 = vector.load %arg6[%c0_18, %c0_19] : memref<48x128xf32, #tpu.memory_space<vmem>>, vector<48x128xf32>
    tpu.vector_store %arg6[%c0_18, %c0_19], %39 {strides = array<i32>} : memref<48x128xf32, #tpu.memory_space<vmem>>, vector<48x128xf32>,
    return
  }
  func.func @transform_0(%arg0: i32) -> (i32, i32) {
    %c0_i32 = arith.constant 0 : i32
    %c0_i32_0 = arith.constant 0 : i32
    return %arg0, %c0_i32 : i32, i32
  }
  func.func @transform_1(%arg0: i32) -> (i32, i32) {
    %c0_i32 = arith.constant 0 : i32
    %c0_i32_0 = arith.constant 0 : i32
    return %arg0, %c0_i32 : i32, i32
  }
  func.func @transform_2(%arg0: i32) -> (i32, i32) {
    %c0_i32 = arith.constant 0 : i32
    %c0_i32_0 = arith.constant 0 : i32
    %c0_i32_1 = arith.constant 0 : i32
    return %c0_i32, %c0_i32_0 : i32, i32
  }
  func.func @transform_3(%arg0: i32) -> (i32, i32) {
    %c0_i32 = arith.constant 0 : i32
    %c0_i32_0 = arith.constant 0 : i32
    %c0_i32_1 = arith.constant 0 : i32
    return %c0_i32, %c0_i32_0 : i32, i32
  }
  func.func @transform_4(%arg0: i32) -> (i32, i32) {
    %c0_i32 = arith.constant 0 : i32
    %c0_i32_0 = arith.constant 0 : i32
    %c0_i32_1 = arith.constant 0 : i32
    return %c0_i32, %c0_i32_0 : i32, i32
  }
  func.func @transform_5(%arg0: i32) -> (i32, i32) {
    %c0_i32 = arith.constant 0 : i32
    %c0_i32_0 = arith.constant 0 : i32
    return %arg0, %c0_i32 : i32, i32
  }
}

module attributes {stable_mosaic.version = 11 : i64} {
  func.func @src_kernel(%arg0: i32, %arg1: memref<48x128xf32, #tpu.memory_space<vmem>>, %arg2: memref<128x128xbf16, #tpu.memory_space<vmem>>, %arg3: memref<1x128xf32, #tpu.memory_space<vmem>>, %arg4: memref<1x128xf32, #tpu.memory_space<vmem>>, %arg5: memref<48x128xf32, #tpu.memory_space<vmem>>) attributes {dimension_semantics = [#tpu.dimension_semantics<parallel>], iteration_bounds = array<i64: 1>, scalar_prefetch = 0 : i64, scratch_operands = 0 : i64, tpu.core_type = #tpu.core_type<tc>, window_params = [{transform_indices = @transform_0, window_bounds = array<i64: 48, 128>}, {pipeline_mode = #tpu.pipeline_mode<synchronous>, transform_indices = @transform_1, window_bounds = array<i64: 128, 128>}, {pipeline_mode = #tpu.pipeline_mode<synchronous>, transform_indices = @transform_2, window_bounds = array<i64: 1, 128>}, {pipeline_mode = #tpu.pipeline_mode<synchronous>, transform_indices = @transform_3, window_bounds = array<i64: 1, 128>}, {transform_indices = @transform_4, window_bounds = array<i64: 48, 128>}]} {
    %c0 = arith.constant 0 : index
    %c0_0 = arith.constant 0 : index
    %0 = vector.load %arg1[%c0, %c0_0] : memref<48x128xf32, #tpu.memory_space<vmem>>, vector<48x128xf32>
    %1 = arith.truncf %0 : vector<48x128xf32> to vector<48x128xbf16>
    %c0_1 = arith.constant 0 : index
    %c0_2 = arith.constant 0 : index
    %2 = vector.load %arg2[%c0_1, %c0_2] : memref<128x128xbf16, #tpu.memory_space<vmem>>, vector<128x128xbf16>
    %cst = arith.constant dense<0.000000e+00> : vector<48x128xf32>
    %3 = tpu.matmul %1, %2, %cst {dimension_numbers = #tpu.dot_dimension_numbers<[1], [0], [0], [1], [0, 0, 1, 1], [], []>} : vector<48x128xbf16>, vector<128x128xbf16>, vector<48x128xf32> -> vector<48x128xf32>
    %c0_3 = arith.constant 0 : index
    %c0_4 = arith.constant 0 : index
    %4 = vector.load %arg3[%c0_3, %c0_4] : memref<1x128xf32, #tpu.memory_space<vmem>>, vector<1x128xf32>
    %c0_5 = arith.constant 0 : index
    %c0_6 = arith.constant 0 : index
    %5 = vector.load %arg4[%c0_5, %c0_6] : memref<1x128xf32, #tpu.memory_space<vmem>>, vector<1x128xf32>
    %6 = arith.negf %3 : vector<48x128xf32>
    %7 = math.exp %6 : vector<48x128xf32>
    %cst_7 = arith.constant 1.000000e+00 : f32
    %8 = vector.broadcast %cst_7 : f32 to vector<48x128xf32>
    %9 = arith.addf %8, %7 : vector<48x128xf32>
    %10 = arith.divf %8, %9 : vector<48x128xf32>
    %11 = arith.mulf %3, %10 : vector<48x128xf32>
    %cst_8 = arith.constant dense<0.000000e+00> : vector<48xf32>
    %12 = vector.multi_reduction <add>, %11, %cst_8 [1] : vector<48x128xf32> to vector<48xf32>
    %13 = vector.shape_cast %12 : vector<48xf32> to vector<48x1xf32>
    %cst_9 = arith.constant 1.280000e+02 : f32
    %14 = vector.broadcast %cst_9 : f32 to vector<48x1xf32>
    %15 = arith.divf %13, %14 : vector<48x1xf32>
    %16 = arith.mulf %11, %11 : vector<48x128xf32>
    %cst_10 = arith.constant dense<0.000000e+00> : vector<48xf32>
    %17 = vector.multi_reduction <add>, %16, %cst_10 [1] : vector<48x128xf32> to vector<48xf32>
    %18 = vector.shape_cast %17 : vector<48xf32> to vector<48x1xf32>
    %cst_11 = arith.constant 1.280000e+02 : f32
    %19 = vector.broadcast %cst_11 : f32 to vector<48x1xf32>
    %20 = arith.divf %18, %19 : vector<48x1xf32>
    %21 = arith.mulf %15, %15 : vector<48x1xf32>
    %22 = arith.subf %20, %21 : vector<48x1xf32>
    %cst_12 = arith.constant 0.000000e+00 : f32
    %23 = vector.broadcast %cst_12 : f32 to vector<48x1xf32>
    %24 = arith.maximumf %22, %23 : vector<48x1xf32>
    %25 = vector.broadcast %15 : vector<48x1xf32> to vector<48x128xf32>
    %26 = arith.subf %11, %25 : vector<48x128xf32>
    %cst_13 = arith.constant 9.99999974E-6 : f32
    %27 = vector.broadcast %cst_13 : f32 to vector<48x1xf32>
    %28 = arith.addf %24, %27 : vector<48x1xf32>
    %29 = math.rsqrt %28 : vector<48x1xf32>
    %30 = vector.broadcast %29 : vector<48x1xf32> to vector<48x128xf32>
    %31 = arith.mulf %26, %30 : vector<48x128xf32>
    %32 = vector.broadcast %4 : vector<1x128xf32> to vector<48x128xf32>
    %33 = arith.mulf %31, %32 : vector<48x128xf32>
    %34 = vector.broadcast %5 : vector<1x128xf32> to vector<48x128xf32>
    %35 = arith.addf %33, %34 : vector<48x128xf32>
    %c0_14 = arith.constant 0 : index
    %c0_15 = arith.constant 0 : index
    %36 = vector.load %arg1[%c0_14, %c0_15] : memref<48x128xf32, #tpu.memory_space<vmem>>, vector<48x128xf32>
    %37 = arith.addf %36, %35 : vector<48x128xf32>
    %c0_16 = arith.constant 0 : index
    %c0_17 = arith.constant 0 : index
    %38 = vector.load %arg5[%c0_16, %c0_17] : memref<48x128xf32, #tpu.memory_space<vmem>>, vector<48x128xf32>
    tpu.vector_store %arg5[%c0_16, %c0_17], %37 {strides = array<i32>} : memref<48x128xf32, #tpu.memory_space<vmem>>, vector<48x128xf32>,
    return
  }
  func.func @transform_0(%arg0: i32) -> (i32, i32) {
    %c0_i32 = arith.constant 0 : i32
    %c0_i32_0 = arith.constant 0 : i32
    return %arg0, %c0_i32 : i32, i32
  }
  func.func @transform_1(%arg0: i32) -> (i32, i32) {
    %c0_i32 = arith.constant 0 : i32
    %c0_i32_0 = arith.constant 0 : i32
    %c0_i32_1 = arith.constant 0 : i32
    return %c0_i32, %c0_i32_0 : i32, i32
  }
  func.func @transform_2(%arg0: i32) -> (i32, i32) {
    %c0_i32 = arith.constant 0 : i32
    %c0_i32_0 = arith.constant 0 : i32
    %c0_i32_1 = arith.constant 0 : i32
    return %c0_i32, %c0_i32_0 : i32, i32
  }
  func.func @transform_3(%arg0: i32) -> (i32, i32) {
    %c0_i32 = arith.constant 0 : i32
    %c0_i32_0 = arith.constant 0 : i32
    %c0_i32_1 = arith.constant 0 : i32
    return %c0_i32, %c0_i32_0 : i32, i32
  }
  func.func @transform_4(%arg0: i32) -> (i32, i32) {
    %c0_i32 = arith.constant 0 : i32
    %c0_i32_0 = arith.constant 0 : i32
    return %arg0, %c0_i32 : i32, i32
  }
}

</mosaic_0001>

<bundles_post_ra>
// kernel: lora_n2e2n_forward.3
= control target key start
LH: loop header
LB: loop body
LE: loop exit
PB: predicated region body
PF: predicated region fallthrough
CT: control target
= control target key end

     0   :  { %s1333_s21 = smov 0   ;;  %s1733_s0 = inlined_call_operand.vmem [shape: bf16[256,128], index: 0, kind: input, shape index: {}]   ;;  %s1734_s1 = inlined_call_operand.vmem [shape: f32[256,128], index: 1, kind: input, shape index: {}, may-alias: {1,6}]   ;;  %s1735_s2 = inlined_call_operand.vmem [shape: bf16[256,128], index: 2, kind: input, shape index: {}]   ;;  %s1736_s3 = inlined_call_operand.vmem [shape: f32[1,128], index: 3, kind: input, shape index: {}]   ;;  %s1737_s4 = inlined_call_operand.vmem [shape: f32[1,128], index: 4, kind: input, shape index: {}]   ;;  %s1738_s5 = inlined_call_operand.vmem [shape: bf16[256,128], index: 5, kind: output, shape index: {0}]   ;;  %s1739_s6 = inlined_call_operand.vmem [shape: f32[256,128], index: 6, kind: output, shape index: {1}, may-alias: {1,6}]  }
   0x1 LB: > { %s1066_s22 = sadd.s32 4294967295, %s1295_s21   ;;  %p1070_p0 = scmp.ge.s32.totalorder %s1295_s21, 1  ;;  %s1295_s21 = sphi %s1333_s21, %s17_s21  }
   0x2   : > { %p227_p1 = scmp.lt.s32.totalorder %s1295_s21, 5 }
   0x4   : > { %p228_p2 = pnand %p1070_p0, %p227_p1 }
   0x5   : > { %s1071_s27 = sshll.u32 (!%p228_p2), %s1066_s22, 3 }
   0x6   : > { %231 = sbr.rel (%p228_p2) target bundleno = 402 (0x192), region = 40  ;;  %p268_p3 = scmp.lt.s32.totalorder (!%p228_p2), %s1071_s27, 31 }
   0xb   : > { %v1180_v0 = vld [vmem:[%s1735_s2 + $0x38] sm:$0xff]  ;;  %v1179_v2 = vld [vmem:[%s1735_s2 + $0x30] sm:$0xff]  ;;  %v1178_v4 = vld [vmem:[%s1735_s2 + $0x28] sm:$0xff]  ;;  %s1747_s27 = smov (!%p268_p3, %s1071_s27), 31 }
   0xc   : > { %v1188_v1 = vld [vmem:[%s1735_s2 + $0x78] sm:$0xff]  ;;  %491 = vmatpush.bf16.msra.mxu0 %v1180_v0  ;;  %1212 = vmatpush.bf16.msra.mxu2 %v1180_v0  ;;  %v1187_v3 = vld [vmem:[%s1735_s2 + $0x70] sm:$0xff]  ;;  %v1186_v5 = vld [vmem:[%s1735_s2 + $0x68] sm:$0xff]  ;;  %s1074_s16 = sshll.u32 %s1747_s27, 3  ;;  %s1072_s10 = sshll.u32 %s1747_s27, 2 }
   0xd   : > { %520 = vmatpush.bf16.msra.mxu1 %v1188_v1  ;;  %1220 = vmatpush.bf16.msra.mxu3 %v1188_v1  ;;  %v1177_v6 = vld [vmem:[%s1735_s2 + $0x20] sm:$0xff]  ;;  %v1176_v8 = vld [vmem:[%s1735_s2 + $0x18] sm:$0xff]  ;;  %s1379_s24 = scalar_lea.vmem %s1734_s1, %s1074_s16  ;;  %v1175_v10 = vld [vmem:[%s1735_s2 + $0x10] sm:$0xff]  ;;  %s1422_s15 = scalar_lea.vmem %s1733_s0, %s1072_s10 }
   0xe   : > { %v1185_v7 = vld [vmem:[%s1735_s2 + $0x60] sm:$0xff]  ;;  %v1184_v9 = vld [vmem:[%s1735_s2 + $0x58] sm:$0xff]  ;;  %v1183_v11 = vld [vmem:[%s1735_s2 + $0x50] sm:$0xff]  ;;  %s1626_s26 = scalar_lea.vmem %s1739_s6, %s1074_s16  ;;  %s1691_s29 = scalar_lea.vmem %s1738_s5, %s1072_s10 }
   0xf   : > { %v1388_v12 = vld [vmem:[%s1379_s24] sm:$0xff]  ;;  %v1391_v13 = vld [vmem:[%s1379_s24 + $0x8] sm:$0xff]  ;;  %v1171_v29 = vld [vmem:[%s1422_s15 + $0x10] sm:$0xff] }
  0x10   : > { %492 = vmatpush.bf16.msra.mxu0 %v1179_v2  ;;  %1213 = vmatpush.bf16.msra.mxu2 %v1179_v2  ;;  %v1394_v14 = vld [vmem:[%s1379_s24 + $0x20] sm:$0xff]  ;;  %v1397_v15 = vld [vmem:[%s1379_s24 + $0x28] sm:$0xff]  ;;  %v307_v16 = vpack.c.bf16 %v1388_v12, %v1388_v12  ;;  %v308_v18 = vpack.c.bf16 %v1391_v13, %v1391_v13  ;;  %v1430_v32 = vld [vmem:[%s1379_s24 + $0x10] sm:$0xff] }
  0x11   : > { %521 = vmatpush.bf16.msra.mxu1 %v1187_v3  ;;  %1221 = vmatpush.bf16.msra.mxu3 %v1187_v3  ;;  %v1174_v17 = vld [vmem:[%s1735_s2 + $0x8] sm:$0xff]  ;;  %v311_v19 = vpack.c.bf16 %v1394_v14, %v1394_v14  ;;  %v312_v20 = vpack.c.bf16 %v1397_v15, %v1397_v15  ;;  %v1173_v22 = vld [vmem:[%s1735_s2] sm:$0xff]  ;;  %v1433_v33 = vld [vmem:[%s1379_s24 + $0x18] sm:$0xff]  ;;  %v309_v36 = vpack.c.bf16 %v1430_v32, %v1430_v32 }
  0x12   : > { %v1182_v21 = vld [vmem:[%s1735_s2 + $0x48] sm:$0xff]  ;;  %v347_v23 = vunpack.c.l.b16 %v307_v16  ;;  %v348_v24 = vunpack.c.l.b16 %v308_v18  ;;  %v1181_v27 = vld [vmem:[%s1735_s2 + $0x40] sm:$0xff]  ;;  %v1436_v34 = vld [vmem:[%s1379_s24 + $0x30] sm:$0xff]  ;;  %v310_v37 = vpack.c.bf16 %v1433_v33, %v1433_v33 }
  0x13   : > { %v351_v25 = vunpack.c.l.b16 %v311_v19  ;;  %v352_v26 = vunpack.c.l.b16 %v312_v20  ;;  %v1169_v28 = vld [vmem:[%s1422_s15] sm:$0xff]  ;;  %v1439_v35 = vld [vmem:[%s1379_s24 + $0x38] sm:$0xff]  ;;  %v313_v38 = vpack.c.bf16 %v1436_v34, %v1436_v34  ;;  %v349_v40 = vunpack.c.l.b16 %v309_v36  ;;  %v1170_v44 = vld [vmem:[%s1422_s15 + $0x8] sm:$0xff] }
  0x14   : > { %493 = vmatpush.bf16.msra.mxu0 %v1178_v4  ;;  %1214 = vmatpush.bf16.msra.mxu2 %v1178_v4  ;;  %v355_v30 = vpack.c.b16 %v348_v24, %v347_v23  ;;  %v314_v39 = vpack.c.bf16 %v1439_v35, %v1439_v35  ;;  %v350_v41 = vunpack.c.l.b16 %v310_v37  ;;  %v1172_v45 = vld [vmem:[%s1422_s15 + $0x18] sm:$0xff] }
  0x15   : > { %522 = vmatpush.bf16.msra.mxu1 %v1186_v5  ;;  %1222 = vmatpush.bf16.msra.mxu3 %v1186_v5  ;;  %v357_v31 = vpack.c.b16 %v352_v26, %v351_v25  ;;  %v353_v42 = vunpack.c.l.b16 %v313_v38 }
  0x16   : > { %v354_v43 = vunpack.c.l.b16 %v314_v39  ;;  %v356_v46 = vpack.c.b16 %v350_v41, %v349_v40 }
  0x18   : > { %494 = vmatpush.bf16.msra.mxu0 %v1177_v6  ;;  %1215 = vmatpush.bf16.msra.mxu2 %v1177_v6  ;;  %v358_v47 = vpack.c.b16 %v354_v43, %v353_v42 }
  0x19   : > { %523 = vmatpush.bf16.msra.mxu1 %v1185_v7  ;;  %1223 = vmatpush.bf16.msra.mxu3 %v1185_v7 }
  0x1c   : > { %495 = vmatpush.bf16.msra.mxu0 %v1176_v8  ;;  %1216 = vmatpush.bf16.msra.mxu2 %v1176_v8 }
  0x1d   : > { %524 = vmatpush.bf16.msra.mxu1 %v1184_v9  ;;  %1224 = vmatpush.bf16.msra.mxu3 %v1184_v9 }
  0x20   : > { %496 = vmatpush.bf16.msra.mxu0 %v1175_v10  ;;  %1217 = vmatpush.bf16.msra.mxu2 %v1175_v10 }
  0x21   : > { %525 = vmatpush.bf16.msra.mxu1 %v1183_v11  ;;  %1225 = vmatpush.bf16.msra.mxu3 %v1183_v11 }
  0x24   : > { %497 = vmatpush.bf16.msra.mxu0 %v1174_v17  ;;  %1218 = vmatpush.bf16.msra.mxu2 %v1174_v17 }
  0x25   : > { %526 = vmatpush.bf16.msra.mxu1 %v1182_v21  ;;  %1226 = vmatpush.bf16.msra.mxu3 %v1182_v21 }
  0x28   : > { %498 = vmatpush.bf16.msra.mxu0 %v1173_v22  ;;  %1219 = vmatpush.bf16.msra.mxu2 %v1173_v22 }
  0x29   : > { %527 = vmatpush.bf16.msra.mxu1 %v1181_v27  ;;  %1227 = vmatpush.bf16.msra.mxu3 %v1181_v27 }
  0x2b   : > { %499 = vmatmul.bf16.vlgmr.msra.gmra.mxu0 %v1169_v28  ;;  %509 = vmatmul.bf16.vlgmr.msra.gmra.mxu2 %v1171_v29 }
  0x2c   : > { %528 = vmatmul.bf16.vlgmr.msra.gmra.mxu1 %v355_v30  ;;  %538 = vmatmul.bf16.vlgmr.msra.gmra.mxu3 %v357_v31 }
  0x3b   : > { %504 = vmatmul.bf16.gmra.mxu0 %v1170_v44  ;;  %514 = vmatmul.bf16.gmra.mxu2 %v1172_v45 }
  0x3c   : > { %533 = vmatmul.bf16.gmra.mxu1 %v356_v46  ;;  %543 = vmatmul.bf16.gmra.mxu3 %v358_v47 }
  0xa8   : > { %v500_v48 = vpop.f32.mrf.mxu0 }
  0xa9   : > { %v529_v49 = vpop.f32.mrf.mxu1 }
  0xaa   : > { %v1451_v50 = vadd.f32 %v529_v49, %v500_v48 }
  0xac   : > { %v1159_v51 = vmul.f32 -1.442695, %v1451_v50 }
  0xae   : > { %1239 = vpow2.f32 %v1159_v51  ;;  %v510_v52 = vpop.f32.mrf.mxu2 }
  0xaf   : > { %v539_v53 = vpop.f32.mrf.mxu3 }
  0xb0   : > { %v1454_v54 = vadd.f32 %v539_v53, %v510_v52  ;;  %v502_v55 = vpop.f32.mrf.mxu0 }
  0xb1   : > { %v531_v56 = vpop.f32.mrf.mxu1 }
  0xb2   : > { %v1163_v57 = vmul.f32 -1.442695, %v1454_v54  ;;  %v1457_v58 = vadd.f32 %v531_v56, %v502_v55 }
  0xb4   : > { %v1240_v59 = vpop.eup %1239  ;;  %1241 = vpow2.f32 %v1163_v57  ;;  %v1160_v60 = vmul.f32 -1.442695, %v1457_v58 }
  0xb5   : > { %v575_v61 = vadd.f32 1.0, %v1240_v59 }
  0xb6   : > { %1243 = vpow2.f32 %v1160_v60  ;;  %v512_v62 = vpop.f32.mrf.mxu2 }
  0xb7   : > { %1245 = vrcp.f32 %v575_v61  ;;  %v541_v63 = vpop.f32.mrf.mxu3  ;;  %v592_v20 = vand.u32 2147483647, %v575_v61  ;;  %v594_v21 = vand.u32 2147483648, %v575_v61  ;;  %vm588_vm1 = vweird.f32 %v575_v61 }
  0xb8   : > { %v1460_v0 = vadd.f32 %v541_v63, %v512_v62  ;;  %v505_v1 = vpop.f32.mrf.mxu0 }
  0xb9   : > { %v534_v2 = vpop.f32.mrf.mxu1  ;;  %vm593_vm3 = vcmp.eq.f32.partialorder %v592_v20, 8.507059e+37  ;;  %v595_v37 = vor.u32 1.1754944e-38, %v594_v21 }
  0xba   : > { %v1242_v3 = vpop.eup %1241  ;;  %v1164_v4 = vmul.f32 -1.442695, %v1460_v0  ;;  %v1463_v5 = vadd.f32 %v534_v2, %v505_v1 }
  0xbb   : > { %v1465_v6 = vadd.f32 1.0, %v1242_v3 }
  0xbc   : > { %v1244_v7 = vpop.eup %1243  ;;  %1247 = vpow2.f32 %v1164_v4  ;;  %v1161_v8 = vmul.f32 -1.442695, %v1463_v5 }
  0xbd   : > { %v1246_v9 = vpop.eup %1245  ;;  %1249 = vrcp.f32 %v1465_v6  ;;  %v1469_v11 = vadd.f32 1.0, %v1244_v7  ;;  %vm648_vm4 = vweird.f32 %v1465_v6  ;;  %v652_v44 = vand.u32 2147483647, %v1465_v6 }
  0xbe   : > { %v584_v10 = vmul.f32 %v1246_v9, %v575_v61  ;;  %1251 = vpow2.f32 %v1161_v8  ;;  %v515_v16 = vpop.f32.mrf.mxu2  ;;  %vm589_vm0 = vweird.f32 %v1246_v9  ;;  %v654_v51 = vand.u32 2147483648, %v1465_v6 }
  0xbf   : > { %v544_v17 = vpop.f32.mrf.mxu3  ;;  %1253 = vrcp.f32 %v1469_v11  ;;  %vm590_vm2 = vmor %vm588_vm1, %vm589_vm0  ;;  %v607_v53 = vand.u32 2147483647, %v1469_v11  ;;  %v609_v55 = vand.u32 2147483648, %v1469_v11  ;;  %vm653_vm8 = vcmp.eq.f32.partialorder %v652_v44, 8.507059e+37 }
  0xc0   : > { %v585_v18 = vsub.f32 1.0, %v584_v10  ;;  %v507_v19 = vpop.f32.mrf.mxu0  ;;  %v1472_v22 = vadd.f32 %v544_v17, %v515_v16  ;;  %v655_v3 = vor.u32 1.1754944e-38, %v654_v51  ;;  %vm603_vm9 = vweird.f32 %v1469_v11 }
  0xc1   : > { %v536_v23 = vpop.f32.mrf.mxu1  ;;  %vm608_vm11 = vcmp.eq.f32.partialorder %v607_v53, 8.507059e+37  ;;  %v610_v8 = vor.u32 1.1754944e-38, %v609_v55 }
  0xc2   : > { %v1248_v24 = vpop.eup %1247  ;;  %v586_v25 = vmul.f32 %v1246_v9, %v585_v18  ;;  %v1474_v26 = vadd.f32 %v536_v23, %v507_v19  ;;  %v1165_v29 = vmul.f32 -1.442695, %v1472_v22 }
  0xc3   : > { %v1250_v27 = vpop.eup %1249  ;;  %v1476_v28 = vadd.f32 1.0, %v1248_v24 }
  0xc4   : > { %v1252_v30 = vpop.eup %1251  ;;  %v587_v31 = vadd.f32 %v1246_v9, %v586_v25  ;;  %v644_v36 = vmul.f32 %v1250_v27, %v1465_v6  ;;  %v1162_v38 = vmul.f32 -1.442695, %v1474_v26  ;;  %vm649_vm5 = vweird.f32 %v1250_v27 }
  0xc5   : > { %1255 = vrcp.f32 %v1476_v28  ;;  %v1254_v39 = vpop.eup %1253  ;;  %v1482_v42 = vadd.f32 1.0, %v1252_v30  ;;  %vm1501_vm6 = vmor %vm648_vm4, %vm649_vm5  ;;  %vm663_vm12 = vweird.f32 %v1476_v28  ;;  %v669_v21 = vand.u32 2147483648, %v1476_v28 }
  0xc6   : > { %v591_v40 = vsel %vm590_vm2, %v1246_v9, %v587_v31  ;;  %v645_v41 = vsub.f32 1.0, %v644_v36  ;;  %1257 = vpow2.f32 %v1165_v29  ;;  %v599_v45 = vmul.f32 %v1254_v39, %v1469_v11  ;;  %v517_v46 = vpop.f32.mrf.mxu2 }
  0xc7   : > { %v596_v43 = vsel %vm593_vm3, %v595_v37, %v591_v40  ;;  %v546_v47 = vpop.f32.mrf.mxu3  ;;  %1259 = vrcp.f32 %v1482_v42  ;;  %vm604_vm7 = vweird.f32 %v1254_v39  ;;  %v667_v29 = vand.u32 2147483647, %v1476_v28 }
  0xc8   : > { %v1488_v48 = vmul.f32 %v596_v43, %v1451_v50  ;;  %v646_v49 = vmul.f32 %v1250_v27, %v645_v41  ;;  %v600_v52 = vsub.f32 1.0, %v599_v45  ;;  %1261 = vpow2.f32 %v1162_v38  ;;  %vm605_vm10 = vmor %vm603_vm9, %vm604_vm7 }
  0xc9   : > { %v1494_v57 = vadd.f32 %v546_v47, %v517_v46  ;;  %v624_v30 = vand.u32 2147483648, %v1482_v42  ;;  %v670_v38 = vor.u32 1.1754944e-38, %v669_v21  ;;  %vm618_vm0 = vweird.f32 %v1482_v42 }
  0xca   : > { %v647_v56 = vadd.f32 %v1250_v27, %v646_v49  ;;  %711 = vadd.xlane.f32.xlu0 %v1488_v48  ;;  %v742_v50 = vmul.f32 %v1488_v48, %v1488_v48  ;;  %v601_v61 = vmul.f32 %v1254_v39, %v600_v52  ;;  %vm668_vm1 = vcmp.eq.f32.partialorder %v667_v29, 8.507059e+37 }
  0xcb   : > { %v1256_v59 = vpop.eup %1255  ;;  %v1166_v2 = vmul.f32 -1.442695, %v1494_v57  ;;  %v625_v41 = vor.u32 1.1754944e-38, %v624_v30 }
  0xcc   : > { %v1258_v62 = vpop.eup %1257  ;;  %v651_v63 = vsel %vm1501_vm6, %v1250_v27, %v647_v56  ;;  %v659_v1 = vmul.f32 %v1256_v59, %v1476_v28  ;;  %750 = vadd.xlane.f32.xlu2 %v742_v50  ;;  %v602_v4 = vadd.f32 %v1254_v39, %v601_v61  ;;  %vm664_vm13 = vweird.f32 %v1256_v59 }
  0xcd   : > { %v1510_v6 = vadd.f32 1.0, %v1258_v62  ;;  %v1260_v7 = vpop.eup %1259  ;;  %1263 = vpow2.f32 %v1166_v2  ;;  %v656_v10 = vsel %vm653_vm8, %v655_v3, %v651_v63  ;;  %vm1524_vm14 = vmor %vm663_vm12, %vm664_vm13 }
  0xce   : > { %v660_v9 = vsub.f32 1.0, %v659_v1  ;;  %v606_v16 = vsel %vm605_vm10, %v1254_v39, %v602_v4  ;;  %v614_v17 = vmul.f32 %v1260_v7, %v1482_v42  ;;  %v1262_v18 = vpop.eup %1261  ;;  %v1520_v25 = vmul.f32 %v656_v10, %v1454_v54 }
  0xcf   : > { %1265 = vrcp.f32 %v1510_v6  ;;  %v611_v19 = vsel %vm608_vm11, %v610_v8, %v606_v16  ;;  %v578_v24 = vadd.f32 1.0, %v1262_v18  ;;  %vm619_vm15 = vweird.f32 %v1260_v7 }
  0xd0   : > { %v661_v20 = vmul.f32 %v1256_v59, %v660_v9  ;;  %v1516_v11 = vmul.f32 %v611_v19, %v1457_v58  ;;  %v615_v23 = vsub.f32 1.0, %v614_v17  ;;  %v622_v58 = vand.u32 2147483647, %v1482_v42  ;;  %vm620_vm2 = vmor %vm618_vm0, %vm619_vm15 }
  0xd1   : > { %1267 = vrcp.f32 %v578_v24  ;;  %v746_v52 = vmul.f32 %v1520_v25, %v1520_v25  ;;  %vm678_vm5 = vweird.f32 %v1510_v6  ;;  %vm633_vm7 = vweird.f32 %v578_v24 }
  0xd2   : > { %v662_v27 = vadd.f32 %v1256_v59, %v661_v20  ;;  %v616_v36 = vmul.f32 %v1260_v7, %v615_v23  ;;  %713 = vadd.xlane.f32.xlu0 %v1516_v11  ;;  %vm623_vm3 = vcmp.eq.f32.partialorder %v622_v58, 8.507059e+37  ;;  %v682_v2 = vand.u32 2147483647, %v1510_v6 }
  0xd3   : > { %v1264_v37 = vpop.eup %1263  ;;  %v743_v4 = vmul.f32 %v1516_v11, %v1516_v11 }
  0xd4   : > { %v666_v54 = vsel %vm1524_vm14, %v1256_v59, %v662_v27  ;;  %719 = vadd.xlane.f32.xlu2 %v1520_v25  ;;  %v617_v39 = vadd.f32 %v1260_v7, %v616_v36  ;;  %v582_v40 = vadd.f32 1.0, %v1264_v37  ;;  %v639_v59 = vand.u32 2147483648, %v578_v24 }
  0xd5   : > { %v1266_v28 = vpop.eup %1265  ;;  %v671_v44 = vsel %vm668_vm1, %v670_v38, %v666_v54  ;;  %vm683_vm12 = vcmp.eq.f32.partialorder %v682_v2, 8.507059e+37  ;;  %v1297_v37 = vmov 128.0  }
  0xd6   : > { %v674_v43 = vmul.f32 %v1266_v28, %v1510_v6  ;;  %v621_v45 = vsel %vm620_vm2, %v1260_v7, %v617_v39  ;;  %1269 = vrcp.f32 %v582_v40  ;;  %v1541_v42 = vmul.f32 %v671_v44, %v1460_v0 }
  0xd7   : > { %v626_v46 = vsel %vm623_vm3, %v625_v41, %v621_v45  ;;  %v1268_v49 = vpop.eup %1267  ;;  %vm679_vm6 = vweird.f32 %v1266_v28  ;;  %v684_v0 = vand.u32 2147483648, %v1510_v6  ;;  %v640_v3 = vor.u32 1.1754944e-38, %v639_v59 }
  0xd8   : > { %v675_v47 = vsub.f32 1.0, %v674_v43  ;;  %v1536_v51 = vmul.f32 %v626_v46, %v1463_v5  ;;  %v629_v53 = vmul.f32 %v1268_v49, %v578_v24  ;;  %vm634_vm4 = vweird.f32 %v1268_v49  ;;  %vm1552_vm9 = vmor %vm678_vm5, %vm679_vm6 }
  0xd9   : > { %v637_v5 = vand.u32 2147483647, %v578_v24  ;;  %vm635_vm8 = vmor %vm633_vm7, %vm634_vm4  ;;  %v685_v6 = vor.u32 1.1754944e-38, %v684_v0  ;;  %v699_v20 = vand.u32 2147483648, %v582_v40  ;;  %vm693_vm13 = vweird.f32 %v582_v40 }
  0xda   : > { %v676_v55 = vmul.f32 %v1266_v28, %v675_v47  ;;  %758 = vadd.xlane.f32.xlu0 %v746_v52  ;;  %715 = vadd.xlane.f32.xlu1 %v1536_v51  ;;  %v630_v56 = vsub.f32 1.0, %v629_v53  ;;  %v744_v7 = vmul.f32 %v1536_v51, %v1536_v51  ;;  %v697_v21 = vand.u32 2147483647, %v582_v40 }
  0xdb   : > { %vm638_vm10 = vcmp.eq.f32.partialorder %v637_v5, 8.507059e+37  ;;  %v700_v29 = vor.u32 1.1754944e-38, %v699_v20  ;;  %1271 = vrcp.f32 %v1297_v37 }
  0xdc   : > { %721 = vadd.xlane.f32.xlu2 %v1541_v42  ;;  %v1270_v50 = vpop.eup %1269  ;;  %v631_v60 = vmul.f32 %v1268_v49, %v630_v56  ;;  %v677_v62 = vadd.f32 %v1266_v28, %v676_v55  ;;  %vm698_vm15 = vcmp.eq.f32.partialorder %v697_v21, 8.507059e+37  ;;  %v1603_v21 = vld [vmem:[%s1736_s3] ss:$0 sm:$0xff] }
  0xdd   : > { %v689_v61 = vmul.f32 %v1270_v50, %v582_v40  ;;  %vm694_vm11 = vweird.f32 %v1270_v50 }
  0xde   : > { %v632_v63 = vadd.f32 %v1268_v49, %v631_v60  ;;  %v681_v16 = vsel %vm1552_vm9, %v1266_v28, %v677_v62  ;;  %vm695_vm14 = vmor %vm693_vm13, %vm694_vm11 }
  0xdf   : > { %v690_v1 = vsub.f32 1.0, %v689_v61  ;;  %v686_v23 = vsel %vm683_vm12, %v685_v6, %v681_v16 }
  0xe0   : > { %v636_v9 = vsel %vm635_vm8, %v1268_v49, %v632_v63  ;;  %v1564_v30 = vmul.f32 %v686_v23, %v1472_v22  ;;  %v747_v22 = vmul.f32 %v1541_v42, %v1541_v42 }
  0xe1   : > { %v691_v10 = vmul.f32 %v1270_v50, %v690_v1  ;;  %v641_v17 = vsel %vm638_vm10, %v640_v3, %v636_v9  ;;  %v1272_v54 = vpop.eup %1271 }
  0xe2   : > { %752 = vadd.xlane.f32.xlu0 %v743_v4  ;;  %754 = vadd.xlane.f32.xlu1 %v744_v7  ;;  %v1559_v18 = vmul.f32 %v641_v17, %v1474_v26  ;;  %v748_v36 = vmul.f32 %v1564_v30, %v1564_v30  ;;  %v728_v28 = vmul.f32 128.0, %v1272_v54  ;;  %vm732_vm0 = vweird.f32 %v1272_v54 }
  0xe3   : > { %v692_v19 = vadd.f32 %v1270_v50, %v691_v10 }
  0xe4   : > { %v745_v24 = vmul.f32 %v1559_v18, %v1559_v18 }
  0xe5   : > { %v696_v27 = vsel %vm695_vm14, %v1270_v50, %v692_v19 }
  0xe6   : > { %756 = vadd.xlane.f32.xlu2 %v745_v24  ;;  %v701_v31 = vsel %vm698_vm15, %v700_v29, %v696_v27 }
  0xe7   : > { %v1569_v26 = vmul.f32 %v701_v31, %v1494_v57  ;;  %v729_v57 = vsub.f32 1.0, %v728_v28  ;;  %v1611_v31 = vld [vmem:[%s1737_s4] ss:$0 sm:$0xff] }
  0xe9   : > { %v749_v58 = vmul.f32 %v1569_v26, %v1569_v26  ;;  %v730_v38 = vmul.f32 %v1272_v54, %v729_v57 }
  0xea   : > { %723 = vadd.xlane.f32.xlu0 %v1564_v30  ;;  %717 = vadd.xlane.f32.xlu1 %v1559_v18 }
  0xeb   : > { %v731_v39 = vadd.f32 %v1272_v54, %v730_v38 }
  0xed   : > { %v1578_v40 = vsel %vm732_vm0, %v1272_v54, %v731_v39 }
  0xee   : > { %762 = vadd.xlane.f32.xlu2 %v748_v36 }
  0xf2   : > { %764 = vadd.xlane.f32.xlu0 %v749_v58  ;;  %725 = vadd.xlane.f32.xlu1 %v1569_v26 }
  0xfa   : > { %760 = vadd.xlane.f32.xlu1 %v747_v22 }
 0x13d   : > { %v712_v41 = vpop.xlane.xlu0 %711 }
 0x13e   : > { %v734_v43 = vmul.f32 %v1578_v40, %v712_v41 }
 0x13f   : > { %v751_v44 = vpop.xlane.xlu2 %750 }
 0x140   : > { %v774_v45 = vmul.f32 %v734_v43, %v734_v43  ;;  %v766_v46 = vmul.f32 %v751_v44, %v1578_v40  ;;  %v798_v20 = vsub.f32 %v1488_v48, %v734_v43 }
 0x142   : > { %v782_v47 = vsub.f32 %v766_v46, %v774_v45 }
 0x144   : > { %v790_v49 = vmax.f32 %v782_v47, 0.0 }
 0x145   : > { %v714_v53 = vpop.xlane.xlu0 %713 }
 0x146   : > { %v806_v52 = vadd.f32 1e-05, %v790_v49  ;;  %v1591_v3 = vmul.f32 %v1578_v40, %v714_v53 }
 0x147   : > { %v720_v55 = vpop.xlane.xlu2 %719 }
 0x148   : > { %1273 = vrsqrt.f32 %v806_v52  ;;  %v1583_v56 = vmul.f32 %v1578_v40, %v720_v55  ;;  %vm820_vm2 = vweird.f32 %v806_v52  ;;  %v775_v6 = vmul.f32 %v1591_v3, %v1591_v3 }
 0x14a   : > { %v778_v61 = vmul.f32 %v1583_v56, %v1583_v56 }
 0x14d   : > { %v759_v59 = vpop.xlane.xlu0 %758  ;;  %v716_v60 = vpop.xlane.xlu1 %715 }
 0x14e   : > { %v1274_v50 = vpop.eup %1273  ;;  %v770_v62 = vmul.f32 %v759_v59, %v1578_v40  ;;  %v1594_v7 = vmul.f32 %v1578_v40, %v716_v60 }
 0x14f   : > { %v815_v5 = vmul.f32 %v1274_v50, %v806_v52  ;;  %v1588_v1 = vpop.xlane.xlu2 %721  ;;  %vm821_vm1 = vweird.f32 %v1274_v50 }
 0x150   : > { %v786_v63 = vsub.f32 %v770_v62, %v778_v61  ;;  %vm822_vm3 = vmor %vm820_vm2, %vm821_vm1  ;;  %v776_v23 = vmul.f32 %v1594_v7, %v1594_v7 }
 0x151   : > { %v816_v0 = vmul.f32 %v1274_v50, %v815_v5 }
 0x152   : > { %v794_v4 = vmax.f32 %v786_v63, 0.0 }
 0x153   : > { %v817_v2 = vmul.f32 0.5, %v816_v0 }
 0x154   : > { %v810_v9 = vadd.f32 1e-05, %v794_v4 }
 0x155   : > { %v818_v8 = vsub.f32 1.5, %v817_v2  ;;  %v753_v10 = vpop.xlane.xlu0 %752  ;;  %v755_v16 = vpop.xlane.xlu1 %754 }
 0x156   : > { %1275 = vrsqrt.f32 %v810_v9  ;;  %v767_v19 = vmul.f32 %v753_v10, %v1578_v40  ;;  %v768_v24 = vmul.f32 %v755_v16, %v1578_v40  ;;  %vm860_vm5 = vweird.f32 %v810_v9 }
 0x157   : > { %v819_v17 = vmul.f32 %v1274_v50, %v818_v8  ;;  %v802_v10 = vsub.f32 %v1520_v25, %v1583_v56 }
 0x158   : > { %v783_v29 = vsub.f32 %v767_v19, %v775_v6  ;;  %v784_v36 = vsub.f32 %v768_v24, %v776_v23 }
 0x159   : > { %v823_v27 = vsel %vm822_vm3, %v1274_v50, %v819_v17  ;;  %v757_v22 = vpop.xlane.xlu2 %756 }
 0x15a   : > { %v894_v48 = vmul.f32 %v823_v27, %v798_v20  ;;  %v791_v58 = vmax.f32 %v783_v29, 0.0  ;;  %v792_v54 = vmax.f32 %v784_v36, 0.0  ;;  %v769_v52 = vmul.f32 %v757_v22, %v1578_v40 }
 0x15b   : > { %v1656_v27 = vmul.f32 %v1578_v40, %v1588_v1 }
 0x15c   : > { %v905_v37 = vmul.f32 %v1603_v21, %v894_v48  ;;  %v1276_v28 = vpop.eup %1275  ;;  %v1614_v57 = vadd.f32 1e-05, %v791_v58  ;;  %v1619_v41 = vadd.f32 1e-05, %v792_v54  ;;  %v799_v54 = vsub.f32 %v1516_v11, %v1591_v3 }
 0x15d   : > { %v855_v39 = vmul.f32 %v1276_v28, %v810_v9  ;;  %v724_v43 = vpop.xlane.xlu0 %723  ;;  %v718_v44 = vpop.xlane.xlu1 %717  ;;  %vm861_vm4 = vweird.f32 %v1276_v28 }
 0x15e   : > { %v1617_v38 = vadd.f32 %v1611_v31, %v905_v37  ;;  %1277 = vrsqrt.f32 %v1614_v57  ;;  %v1630_v45 = vmul.f32 %v1578_v40, %v724_v43  ;;  %v1633_v46 = vmul.f32 %v1578_v40, %v718_v44  ;;  %vm862_vm6 = vmor %vm860_vm5, %vm861_vm4 }
 0x15f   : > { %v856_v49 = vmul.f32 %v1276_v28, %v855_v39  ;;  %1279 = vrsqrt.f32 %v1619_v41  ;;  %v779_v43 = vmul.f32 %v1656_v27, %v1656_v27  ;;  %vm830_vm9 = vweird.f32 %v1614_v57 }
 0x160   : > { %v948_v47 = vadd.f32 %v1617_v38, %v1388_v12  ;;  %v777_v53 = vmul.f32 %v1633_v46, %v1633_v46  ;;  %v780_v50 = vmul.f32 %v1630_v45, %v1630_v45  ;;  %vm840_vm11 = vweird.f32 %v1619_v41 }
 0x161   : > { %v857_v55 = vmul.f32 0.5, %v856_v49  ;;  %v763_v60 = vpop.xlane.xlu2 %762 }
 0x162   : > { %956 = vst [vmem:[%s1626_s26] sm:$0xff] %v948_v47  ;;  %v785_v59 = vsub.f32 %v769_v52, %v777_v53  ;;  %v772_v61 = vmul.f32 %v763_v60, %v1578_v40 }
 0x163   : > { %v858_v5 = vsub.f32 1.5, %v857_v55  ;;  %v800_v55 = vsub.f32 %v1536_v51, %v1594_v7 }
 0x164   : > { %v1278_v12 = vpop.eup %1277  ;;  %v793_v62 = vmax.f32 %v785_v59, 0.0  ;;  %v788_v4 = vsub.f32 %v772_v61, %v780_v50 }
 0x165   : > { %v1280_v0 = vpop.eup %1279  ;;  %v859_v63 = vmul.f32 %v1276_v28, %v858_v5  ;;  %v825_v2 = vmul.f32 %v1278_v12, %v1614_v57  ;;  %v726_v8 = vpop.xlane.xlu1 %725  ;;  %vm831_vm7 = vweird.f32 %v1278_v12 }
 0x166   : > { %v835_v16 = vmul.f32 %v1280_v0, %v1619_v41  ;;  %v1649_v17 = vadd.f32 1e-05, %v793_v62  ;;  %v765_v6 = vpop.xlane.xlu0 %764  ;;  %v796_v23 = vmax.f32 %v788_v4, 0.0  ;;  %v1652_v24 = vmul.f32 %v1578_v40, %v726_v8  ;;  %vm832_vm10 = vmor %vm830_vm9, %vm831_vm7 }
 0x167   : > { %v863_v19 = vsel %vm862_vm6, %v1276_v28, %v859_v63  ;;  %v826_v20 = vmul.f32 %v1278_v12, %v825_v2  ;;  %v773_v48 = vmul.f32 %v765_v6, %v1578_v40  ;;  %vm841_vm8 = vweird.f32 %v1280_v0 }
 0x168   : > { %v898_v9 = vmul.f32 %v863_v19, %v802_v10  ;;  %v836_v29 = vmul.f32 %v1280_v0, %v835_v16  ;;  %1281 = vrsqrt.f32 %v1649_v17  ;;  %v1659_v56 = vadd.f32 1e-05, %v796_v23  ;;  %vm842_vm12 = vmor %vm840_vm11, %vm841_vm8 }
 0x169   : > { %v827_v25 = vmul.f32 0.5, %v826_v20  ;;  %v781_v36 = vmul.f32 %v1652_v24, %v1652_v24  ;;  %vm850_vm14 = vweird.f32 %v1649_v17 }
 0x16a   : > { %v909_v58 = vmul.f32 %v1603_v21, %v898_v9  ;;  %v837_v22 = vmul.f32 0.5, %v836_v29  ;;  %1283 = vrsqrt.f32 %v1659_v56  ;;  %v801_v29 = vsub.f32 %v1559_v18, %v1633_v46 }
 0x16b   : > { %v828_v37 = vsub.f32 1.5, %v827_v25  ;;  %v789_v1 = vsub.f32 %v773_v48, %v781_v36  ;;  %vm880_vm1 = vweird.f32 %v1659_v56 }
 0x16c   : > { %v1669_v28 = vadd.f32 %v1611_v31, %v909_v58  ;;  %v838_v39 = vsub.f32 1.5, %v837_v22 }
 0x16d   : > { %v829_v44 = vmul.f32 %v1278_v12, %v828_v37  ;;  %v797_v47 = vmax.f32 %v789_v1, 0.0  ;;  %v761_v49 = vpop.xlane.xlu1 %760 }
 0x16e   : > { %v1282_v52 = vpop.eup %1281  ;;  %v952_v53 = vadd.f32 %v1669_v28, %v1394_v14  ;;  %v839_v11 = vmul.f32 %v1280_v0, %v838_v39  ;;  %v771_v3 = vmul.f32 %v761_v49, %v1578_v40 }
 0x16f   : > { %v833_v50 = vsel %vm832_vm10, %v1278_v12, %v829_v44  ;;  %v845_v57 = vmul.f32 %v1282_v52, %v1649_v17  ;;  %v813_v59 = vadd.f32 1e-05, %v797_v47  ;;  %vm851_vm13 = vweird.f32 %v1282_v52 }
 0x170   : > { %v895_v60 = vmul.f32 %v833_v50, %v799_v54  ;;  %v843_v5 = vsel %vm842_vm12, %v1280_v0, %v839_v11  ;;  %960 = vst [vmem:[%s1626_s26 + $0x20] sm:$0xff] %v952_v53  ;;  %v787_v61 = vsub.f32 %v771_v3, %v779_v43  ;;  %v1284_v14 = vpop.eup %1283  ;;  %vm852_vm15 = vmor %vm850_vm14, %vm851_vm13  ;;  %v805_v47 = vsub.f32 %v1569_v26, %v1652_v24 }
 0x171   : > { %v896_v62 = vmul.f32 %v843_v5, %v800_v55  ;;  %v846_v63 = vmul.f32 %v1282_v52, %v845_v57  ;;  %1285 = vrsqrt.f32 %v813_v59  ;;  %v875_v40 = vmul.f32 %v1284_v14, %v1659_v56 }
 0x172   : > { %v906_v41 = vmul.f32 %v1603_v21, %v895_v60  ;;  %v795_v2 = vmax.f32 %v787_v61, 0.0  ;;  %vm881_vm0 = vweird.f32 %v1284_v14  ;;  %vm890_vm4 = vweird.f32 %v813_v59 }
 0x173   : > { %v907_v51 = vmul.f32 %v1603_v21, %v896_v62  ;;  %v847_v7 = vmul.f32 0.5, %v846_v63  ;;  %v876_v4 = vmul.f32 %v1284_v14, %v875_v40  ;;  %vm882_vm2 = vmor %vm880_vm1, %vm881_vm0  ;;  %v803_v26 = vsub.f32 %v1541_v42, %v1656_v27 }
 0x174   : > { %v917_v12 = vadd.f32 %v1611_v31, %v906_v41  ;;  %v811_v8 = vadd.f32 1e-05, %v795_v2 }
 0x175   : > { %v918_v0 = vadd.f32 %v1611_v31, %v907_v51  ;;  %v848_v10 = vsub.f32 1.5, %v847_v7  ;;  %v877_v19 = vmul.f32 0.5, %v876_v4 }
 0x176   : > { %v1192_v16 = vpack.c.bf16 %v917_v12, %v1617_v38  ;;  %v949_v6 = vadd.f32 %v917_v12, %v1391_v13  ;;  %1287 = vrsqrt.f32 %v811_v8  ;;  %vm870_vm7 = vweird.f32 %v811_v8 }
 0x177   : > { %v1286_v20 = vpop.eup %1285  ;;  %v950_v23 = vadd.f32 %v918_v0, %v1430_v32  ;;  %v849_v9 = vmul.f32 %v1282_v52, %v848_v10  ;;  %v878_v25 = vsub.f32 1.5, %v877_v19  ;;  %v804_v32 = vsub.f32 %v1564_v30, %v1630_v45 }
 0x178   : > { %1193 = vst [vmem:[%s1691_s29] sm:$0xff] %v1192_v16   ;;  %v885_v48 = vmul.f32 %v1286_v20, %v813_v59  ;;  %vm891_vm3 = vweird.f32 %v1286_v20 }
 0x179   : > { %v853_v38 = vsel %vm852_vm15, %v1282_v52, %v849_v9  ;;  %957 = vst [vmem:[%s1626_s26 + $0x8] sm:$0xff] %v949_v6  ;;  %v879_v36 = vmul.f32 %v1284_v14, %v878_v25  ;;  %vm892_vm5 = vmor %vm890_vm4, %vm891_vm3 }
 0x17a   : > { %v897_v13 = vmul.f32 %v853_v38, %v801_v29  ;;  %v886_v58 = vmul.f32 %v1286_v20, %v885_v48  ;;  %958 = vst [vmem:[%s1626_s26 + $0x10] sm:$0xff] %v950_v23 }
 0x17b   : > { %v883_v18 = vsel %vm882_vm2, %v1284_v14, %v879_v36 }
 0x17c   : > { %v1288_v17 = vpop.eup %1287  ;;  %v908_v22 = vmul.f32 %v1603_v21, %v897_v13  ;;  %v887_v46 = vmul.f32 0.5, %v886_v58  ;;  %v900_v37 = vmul.f32 %v883_v18, %v804_v32 }
 0x17d   : > { %v865_v1 = vmul.f32 %v1288_v17, %v811_v8  ;;  %vm871_vm6 = vweird.f32 %v1288_v17 }
 0x17e   : > { %v919_v54 = vadd.f32 %v1611_v31, %v908_v22  ;;  %v888_v39 = vsub.f32 1.5, %v887_v46  ;;  %v911_v56 = vmul.f32 %v1603_v21, %v900_v37  ;;  %vm872_vm8 = vmor %vm870_vm7, %vm871_vm6 }
 0x17f   : > { %v866_v43 = vmul.f32 %v1288_v17, %v865_v1 }
 0x180   : > { %v1197_v44 = vpack.c.bf16 %v919_v54, %v918_v0  ;;  %v951_v30 = vadd.f32 %v919_v54, %v1433_v33  ;;  %v889_v45 = vmul.f32 %v1286_v20, %v888_v39  ;;  %v922_v49 = vadd.f32 %v1611_v31, %v911_v56 }
 0x181   : > { %v867_v52 = vmul.f32 0.5, %v866_v43 }
 0x182   : > { %1209 = vst [vmem:[%s1691_s29 + $0x8] sm:$0xff] %v1197_v44   ;;  %v893_v53 = vsel %vm892_vm5, %v1286_v20, %v889_v45  ;;  %v954_v3 = vadd.f32 %v922_v49, %v1436_v34 }
 0x183   : > { %v901_v11 = vmul.f32 %v893_v53, %v805_v47  ;;  %v868_v55 = vsub.f32 1.5, %v867_v52  ;;  %959 = vst [vmem:[%s1626_s26 + $0x18] sm:$0xff] %v951_v30 }
 0x184   : > { %962 = vst [vmem:[%s1626_s26 + $0x30] sm:$0xff] %v954_v3 }
 0x185   : > { %v912_v33 = vmul.f32 %v1603_v21, %v901_v11  ;;  %v869_v50 = vmul.f32 %v1288_v17, %v868_v55 }
 0x187   : > { %v923_v24 = vadd.f32 %v1611_v31, %v912_v33  ;;  %v873_v57 = vsel %vm872_vm8, %v1288_v17, %v869_v50 }
 0x188   : > { %v899_v34 = vmul.f32 %v873_v57, %v803_v26 }
 0x189   : > { %v1207_v59 = vpack.c.bf16 %v923_v24, %v922_v49  ;;  %v955_v60 = vadd.f32 %v923_v24, %v1439_v35 }
 0x18a   : > { %v910_v5 = vmul.f32 %v1603_v21, %v899_v34 }
 0x18b   : > { %1211 = vst [vmem:[%s1691_s29 + $0x18] sm:$0xff] %v1207_v59  }
 0x18c   : > { %963 = vst [vmem:[%s1626_s26 + $0x38] sm:$0xff] %v955_v60  ;;  %v921_v61 = vadd.f32 %v1611_v31, %v910_v5 }
 0x18e   : > { %v1202_v14 = vpack.c.bf16 %v921_v61, %v1669_v28  ;;  %v953_v62 = vadd.f32 %v921_v61, %v1397_v15 }
 0x190   : > { %1210 = vst [vmem:[%s1691_s29 + $0x10] sm:$0xff] %v1202_v14  }
 0x191   : > { %961 = vst [vmem:[%s1626_s26 + $0x28] sm:$0xff] %v953_v62 }
 0x192 PF: > { %s17_s21 = sadd.s32 1, %s1295_s21  }
 0x193   : > { %p14_p4 = scmp.ge.s32.totalorder %s17_s21, 6  }
 0x195   :  { %16 = sbr.rel (!%p14_p4) target bundleno = 1 (0x1), region = 85 }

// kernel: lora_n2e2n_forward.4
= control target key start
LH: loop header
LB: loop body
LE: loop exit
PB: predicated region body
PF: predicated region fallthrough
CT: control target
= control target key end

     0   :  { %s1006_s2 = inlined_call_operand.vmem [shape: bf16[256,128], index: 2, kind: input, shape index: {}]   ;;  %s1007_s1 = inlined_call_operand.vmem [shape: f32[48,128], index: 1, kind: input, shape index: {}, may-alias: {1,5}]   ;;  %s1008_s0 = inlined_call_operand.vmem [shape: bf16[48,128], index: 0, kind: input, shape index: {}]   ;;  %s1009_s3 = inlined_call_operand.vmem [shape: f32[1,128], index: 3, kind: input, shape index: {}]   ;;  %s1010_s4 = inlined_call_operand.vmem [shape: f32[1,128], index: 4, kind: input, shape index: {}]   ;;  %s1011_s5 = inlined_call_operand.vmem [shape: f32[48,128], index: 5, kind: output, shape index: {}, may-alias: {1,5}]  }
   0x1   :  { %v643_v0 = vld [vmem:[%s1006_s2 + $0x38] sm:$0xff]  ;;  %v642_v2 = vld [vmem:[%s1006_s2 + $0x30] sm:$0xff]  ;;  %v641_v4 = vld [vmem:[%s1006_s2 + $0x28] sm:$0xff] }
   0x2   :  { %v651_v1 = vld [vmem:[%s1006_s2 + $0x78] sm:$0xff]  ;;  %202 = vmatpush.bf16.msra.mxu0 %v643_v0  ;;  %652 = vmatpush.bf16.msra.mxu2 %v643_v0  ;;  %v650_v3 = vld [vmem:[%s1006_s2 + $0x70] sm:$0xff]  ;;  %v649_v5 = vld [vmem:[%s1006_s2 + $0x68] sm:$0xff] }
   0x3   :  { %226 = vmatpush.bf16.msra.mxu1 %v651_v1  ;;  %660 = vmatpush.bf16.msra.mxu3 %v651_v1  ;;  %v640_v6 = vld [vmem:[%s1006_s2 + $0x20] sm:$0xff]  ;;  %v639_v8 = vld [vmem:[%s1006_s2 + $0x18] sm:$0xff]  ;;  %v638_v10 = vld [vmem:[%s1006_s2 + $0x10] sm:$0xff] }
   0x4   :  { %v648_v7 = vld [vmem:[%s1006_s2 + $0x60] sm:$0xff]  ;;  %v647_v9 = vld [vmem:[%s1006_s2 + $0x58] sm:$0xff]  ;;  %v646_v11 = vld [vmem:[%s1006_s2 + $0x50] sm:$0xff] }
   0x5   :  { %v779_v12 = vld [vmem:[%s1007_s1] sm:$0xff]  ;;  %v784_v13 = vld [vmem:[%s1007_s1 + $0x8] sm:$0xff]  ;;  %v789_v14 = vld [vmem:[%s1007_s1 + $0x10] sm:$0xff] }
   0x6   :  { %203 = vmatpush.bf16.msra.mxu0 %v642_v2  ;;  %653 = vmatpush.bf16.msra.mxu2 %v642_v2  ;;  %v794_v15 = vld [vmem:[%s1007_s1 + $0x18] sm:$0xff]  ;;  %v32_v16 = vpack.c.bf16 %v779_v12, %v779_v12  ;;  %v637_v17 = vld [vmem:[%s1006_s2 + $0x8] sm:$0xff]  ;;  %v33_v18 = vpack.c.bf16 %v784_v13, %v784_v13  ;;  %v34_v19 = vpack.c.bf16 %v789_v14, %v789_v14  ;;  %v636_v22 = vld [vmem:[%s1006_s2] sm:$0xff] }
   0x7   :  { %227 = vmatpush.bf16.msra.mxu1 %v650_v3  ;;  %661 = vmatpush.bf16.msra.mxu3 %v650_v3  ;;  %v35_v20 = vpack.c.bf16 %v794_v15, %v794_v15  ;;  %v645_v21 = vld [vmem:[%s1006_s2 + $0x48] sm:$0xff]  ;;  %v644_v27 = vld [vmem:[%s1006_s2 + $0x40] sm:$0xff]  ;;  %v635_v38 = vld [vmem:[%s1008_s0 + $0x10] sm:$0xff] }
   0x8   :  { %v62_v23 = vunpack.c.l.b16 %v32_v16  ;;  %v63_v24 = vunpack.c.l.b16 %v33_v18  ;;  %v64_v25 = vunpack.c.l.b16 %v34_v19  ;;  %v633_v28 = vld [vmem:[%s1008_s0] sm:$0xff]  ;;  %v634_v29 = vld [vmem:[%s1008_s0 + $0x8] sm:$0xff] }
   0x9   :  { %v65_v26 = vunpack.c.l.b16 %v35_v20  ;;  %v825_v32 = vld [vmem:[%s1007_s1 + $0x20] sm:$0xff]  ;;  %v830_v33 = vld [vmem:[%s1007_s1 + $0x28] sm:$0xff] }
   0xa   :  { %204 = vmatpush.bf16.msra.mxu0 %v641_v4  ;;  %654 = vmatpush.bf16.msra.mxu2 %v641_v4  ;;  %v68_v30 = vpack.c.b16 %v63_v24, %v62_v23  ;;  %v36_v34 = vpack.c.bf16 %v825_v32, %v825_v32  ;;  %v37_v35 = vpack.c.bf16 %v830_v33, %v830_v33 }
   0xb   :  { %228 = vmatpush.bf16.msra.mxu1 %v649_v5  ;;  %662 = vmatpush.bf16.msra.mxu3 %v649_v5  ;;  %v69_v31 = vpack.c.b16 %v65_v26, %v64_v25 }
   0xc   :  { %v66_v36 = vunpack.c.l.b16 %v36_v34  ;;  %v67_v37 = vunpack.c.l.b16 %v37_v35 }
   0xe   :  { %205 = vmatpush.bf16.msra.mxu0 %v640_v6  ;;  %655 = vmatpush.bf16.msra.mxu2 %v640_v6  ;;  %v70_v39 = vpack.c.b16 %v67_v37, %v66_v36 }
   0xf   :  { %229 = vmatpush.bf16.msra.mxu1 %v648_v7  ;;  %663 = vmatpush.bf16.msra.mxu3 %v648_v7 }
  0x12   :  { %206 = vmatpush.bf16.msra.mxu0 %v639_v8  ;;  %656 = vmatpush.bf16.msra.mxu2 %v639_v8 }
  0x13   :  { %230 = vmatpush.bf16.msra.mxu1 %v647_v9  ;;  %664 = vmatpush.bf16.msra.mxu3 %v647_v9 }
  0x16   :  { %207 = vmatpush.bf16.msra.mxu0 %v638_v10  ;;  %657 = vmatpush.bf16.msra.mxu2 %v638_v10 }
  0x17   :  { %231 = vmatpush.bf16.msra.mxu1 %v646_v11  ;;  %665 = vmatpush.bf16.msra.mxu3 %v646_v11 }
  0x1a   :  { %208 = vmatpush.bf16.msra.mxu0 %v637_v17  ;;  %658 = vmatpush.bf16.msra.mxu2 %v637_v17 }
  0x1b   :  { %232 = vmatpush.bf16.msra.mxu1 %v645_v21  ;;  %666 = vmatpush.bf16.msra.mxu3 %v645_v21 }
  0x1e   :  { %209 = vmatpush.bf16.msra.mxu0 %v636_v22  ;;  %659 = vmatpush.bf16.msra.mxu2 %v636_v22 }
  0x1f   :  { %233 = vmatpush.bf16.msra.mxu1 %v644_v27  ;;  %667 = vmatpush.bf16.msra.mxu3 %v644_v27 }
  0x21   :  { %210 = vmatmul.bf16.vlgmr.msra.gmra.mxu0 %v633_v28  ;;  %215 = vmatmul.bf16.vlgmr.msra.gmra.mxu2 %v634_v29 }
  0x22   :  { %234 = vmatmul.bf16.vlgmr.msra.gmra.mxu1 %v68_v30  ;;  %239 = vmatmul.bf16.vlgmr.msra.gmra.mxu3 %v69_v31 }
  0x31   :  { %220 = vmatmul.bf16.gmra.mxu2 %v635_v38 }
  0x32   :  { %244 = vmatmul.bf16.gmra.mxu3 %v70_v39 }
  0x9e   :  { %v211_v40 = vpop.f32.mrf.mxu0 }
  0x9f   :  { %v235_v41 = vpop.f32.mrf.mxu1 }
  0xa0   :  { %v236_v42 = vadd.f32 %v235_v41, %v211_v40 }
  0xa2   :  { %v627_v43 = vmul.f32 -1.442695, %v236_v42 }
  0xa4   :  { %671 = vpow2.f32 %v627_v43  ;;  %v216_v44 = vpop.f32.mrf.mxu2 }
  0xa5   :  { %v240_v45 = vpop.f32.mrf.mxu3 }
  0xa6   :  { %v839_v46 = vadd.f32 %v240_v45, %v216_v44  ;;  %v213_v47 = vpop.f32.mrf.mxu0 }
  0xa7   :  { %v237_v48 = vpop.f32.mrf.mxu1 }
  0xa8   :  { %v629_v49 = vmul.f32 -1.442695, %v839_v46  ;;  %v842_v50 = vadd.f32 %v237_v48, %v213_v47 }
  0xaa   :  { %v672_v51 = vpop.eup %671  ;;  %673 = vpow2.f32 %v629_v49  ;;  %v628_v52 = vmul.f32 -1.442695, %v842_v50 }
  0xab   :  { %v270_v53 = vadd.f32 1.0, %v672_v51 }
  0xac   :  { %675 = vpow2.f32 %v628_v52  ;;  %v218_v54 = vpop.f32.mrf.mxu2 }
  0xad   :  { %677 = vrcp.f32 %v270_v53  ;;  %v242_v55 = vpop.f32.mrf.mxu3  ;;  %vm281_vm0 = vweird.f32 %v270_v53  ;;  %v287_v1 = vand.u32 2147483648, %v270_v53  ;;  %v285_v4 = vand.u32 2147483647, %v270_v53 }
  0xae   :  { %v845_v56 = vadd.f32 %v242_v55, %v218_v54 }
  0xaf   :  { %v288_v10 = vor.u32 1.1754944e-38, %v287_v1  ;;  %vm286_vm3 = vcmp.eq.f32.partialorder %v285_v4, 8.507059e+37 }
  0xb0   :  { %v674_v57 = vpop.eup %673  ;;  %v630_v58 = vmul.f32 -1.442695, %v845_v56 }
  0xb1   :  { %v272_v59 = vadd.f32 1.0, %v674_v57 }
  0xb2   :  { %v676_v60 = vpop.eup %675  ;;  %679 = vpow2.f32 %v630_v58 }
  0xb3   :  { %v678_v61 = vpop.eup %677  ;;  %681 = vrcp.f32 %v272_v59  ;;  %v848_v63 = vadd.f32 1.0, %v676_v60  ;;  %v315_v22 = vand.u32 2147483647, %v272_v59  ;;  %v317_v25 = vand.u32 2147483648, %v272_v59 }
  0xb4   :  { %v277_v62 = vmul.f32 %v678_v61, %v270_v53  ;;  %v221_v0 = vpop.f32.mrf.mxu2  ;;  %vm282_vm1 = vweird.f32 %v678_v61  ;;  %vm311_vm5 = vweird.f32 %v272_v59 }
  0xb5   :  { %v245_v2 = vpop.f32.mrf.mxu3  ;;  %683 = vrcp.f32 %v848_v63  ;;  %vm853_vm2 = vmor %vm281_vm0, %vm282_vm1  ;;  %v302_v35 = vand.u32 2147483648, %v848_v63  ;;  %v318_v38 = vor.u32 1.1754944e-38, %v317_v25  ;;  %v300_v40 = vand.u32 2147483647, %v848_v63 }
  0xb6   :  { %v278_v3 = vsub.f32 1.0, %v277_v62  ;;  %v851_v5 = vadd.f32 %v245_v2, %v221_v0  ;;  %vm316_vm8 = vcmp.eq.f32.partialorder %v315_v22, 8.507059e+37  ;;  %vm296_vm9 = vweird.f32 %v848_v63 }
  0xb7   :  { %v303_v49 = vor.u32 1.1754944e-38, %v302_v35  ;;  %vm301_vm11 = vcmp.eq.f32.partialorder %v300_v40, 8.507059e+37  ;;  %v709_v35 = vmov 128.0  }
  0xb8   :  { %v680_v6 = vpop.eup %679  ;;  %v279_v7 = vmul.f32 %v678_v61, %v278_v3  ;;  %v631_v16 = vmul.f32 -1.442695, %v851_v5 }
  0xb9   :  { %v682_v8 = vpop.eup %681  ;;  %v857_v11 = vadd.f32 1.0, %v680_v6 }
  0xba   :  { %v280_v17 = vadd.f32 %v678_v61, %v279_v7  ;;  %v307_v18 = vmul.f32 %v682_v8, %v272_v59  ;;  %vm312_vm4 = vweird.f32 %v682_v8 }
  0xbb   :  { %685 = vrcp.f32 %v857_v11  ;;  %v684_v19 = vpop.eup %683  ;;  %vm313_vm6 = vmor %vm311_vm5, %vm312_vm4  ;;  %v332_v60 = vand.u32 2147483648, %v857_v11  ;;  %vm326_vm13 = vweird.f32 %v857_v11  ;;  %v330_v62 = vand.u32 2147483647, %v857_v11 }
  0xbc   :  { %v284_v20 = vsel %vm853_vm2, %v678_v61, %v280_v17  ;;  %v308_v21 = vsub.f32 1.0, %v307_v18  ;;  %687 = vpow2.f32 %v631_v16  ;;  %v223_v23 = vpop.f32.mrf.mxu2  ;;  %v292_v26 = vmul.f32 %v684_v19, %v848_v63 }
  0xbd   :  { %v289_v24 = vsel %vm286_vm3, %v288_v10, %v284_v20  ;;  %v247_v27 = vpop.f32.mrf.mxu3  ;;  %vm297_vm7 = vweird.f32 %v684_v19  ;;  %v333_v2 = vor.u32 1.1754944e-38, %v332_v60  ;;  %vm331_vm15 = vcmp.eq.f32.partialorder %v330_v62, 8.507059e+37 }
  0xbe   :  { %v864_v28 = vmul.f32 %v289_v24, %v236_v42  ;;  %v309_v29 = vmul.f32 %v682_v8, %v308_v21  ;;  %v866_v30 = vadd.f32 %v247_v27, %v223_v23  ;;  %v293_v31 = vsub.f32 1.0, %v292_v26  ;;  %vm298_vm10 = vmor %vm296_vm9, %vm297_vm7 }
  0xc0   :  { %v310_v34 = vadd.f32 %v682_v8, %v309_v29  ;;  %v632_v36 = vmul.f32 -1.442695, %v866_v30  ;;  %372 = vadd.xlane.f32.xlu0 %v864_v28  ;;  %v294_v39 = vmul.f32 %v684_v19, %v293_v31  ;;  %v397_v57 = vmul.f32 %v864_v28, %v864_v28 }
  0xc1   :  { %v686_v37 = vpop.eup %685 }
  0xc2   :  { %v688_v41 = vpop.eup %687  ;;  %v314_v42 = vsel %vm313_vm6, %v682_v8, %v310_v34  ;;  %v322_v43 = vmul.f32 %v686_v37, %v857_v11  ;;  %689 = vpow2.f32 %v632_v36  ;;  %v295_v45 = vadd.f32 %v684_v19, %v294_v39 }
  0xc3   :  { %v319_v44 = vsel %vm316_vm8, %v318_v38, %v314_v42  ;;  %v274_v47 = vadd.f32 1.0, %v688_v41  ;;  %vm327_vm12 = vweird.f32 %v686_v37 }
  0xc4   :  { %v875_v48 = vmul.f32 %v319_v44, %v839_v46  ;;  %v323_v51 = vsub.f32 1.0, %v322_v43  ;;  %v299_v52 = vsel %vm298_vm10, %v684_v19, %v295_v45  ;;  %vm328_vm14 = vmor %vm326_vm13, %vm327_vm12 }
  0xc5   :  { %691 = vrcp.f32 %v274_v47  ;;  %v304_v53 = vsel %vm301_vm11, %v303_v49, %v299_v52  ;;  %v347_v6 = vand.u32 2147483648, %v274_v47  ;;  %v345_v8 = vand.u32 2147483647, %v274_v47 }
  0xc6   :  { %v324_v54 = vmul.f32 %v686_v37, %v323_v51  ;;  %376 = vadd.xlane.f32.xlu1 %v875_v48  ;;  %v399_v55 = vmul.f32 %v875_v48, %v875_v48  ;;  %v883_v46 = vmul.f32 %v304_v53, %v842_v50  ;;  %vm341_vm1 = vweird.f32 %v274_v47 }
  0xc7   :  { %v348_v17 = vor.u32 1.1754944e-38, %v347_v6  ;;  %vm346_vm3 = vcmp.eq.f32.partialorder %v345_v8, 8.507059e+37 }
  0xc8   :  { %v690_v58 = vpop.eup %689  ;;  %v325_v59 = vadd.f32 %v686_v37, %v324_v54  ;;  %407 = vadd.xlane.f32.xlu2 %v399_v55  ;;  %403 = vadd.xlane.f32.xlu0 %v397_v57  ;;  %v398_v50 = vmul.f32 %v883_v46, %v883_v46 }
  0xc9   :  { %v275_v61 = vadd.f32 1.0, %v690_v58 }
  0xca   :  { %v329_v0 = vsel %vm328_vm14, %v686_v37, %v325_v59 }
  0xcb   :  { %v692_v63 = vpop.eup %691  ;;  %693 = vrcp.f32 %v275_v61  ;;  %v334_v4 = vsel %vm331_vm15, %v333_v2, %v329_v0  ;;  %v360_v21 = vand.u32 2147483647, %v275_v61  ;;  %v362_v22 = vand.u32 2147483648, %v275_v61 }
  0xcc   :  { %v337_v1 = vmul.f32 %v692_v63, %v274_v47  ;;  %vm342_vm0 = vweird.f32 %v692_v63  ;;  %v892_v10 = vmul.f32 %v334_v4, %v845_v56  ;;  %vm356_vm5 = vweird.f32 %v275_v61 }
  0xcd   :  { %vm343_vm2 = vmor %vm341_vm1, %vm342_vm0  ;;  %v363_v26 = vor.u32 1.1754944e-38, %v362_v22  ;;  %vm361_vm7 = vcmp.eq.f32.partialorder %v360_v21, 8.507059e+37  ;;  %695 = vrcp.f32 %v709_v35 }
  0xce   :  { %v338_v3 = vsub.f32 1.0, %v337_v1  ;;  %405 = vadd.xlane.f32.xlu1 %v398_v50  ;;  %v400_v56 = vmul.f32 %v892_v10, %v892_v10 }
  0xd0   :  { %v339_v7 = vmul.f32 %v692_v63, %v338_v3  ;;  %374 = vadd.xlane.f32.xlu0 %v883_v46 }
  0xd1   :  { %v694_v9 = vpop.eup %693 }
  0xd2   :  { %v340_v11 = vadd.f32 %v692_v63, %v339_v7  ;;  %v352_v16 = vmul.f32 %v694_v9, %v275_v61  ;;  %vm357_vm4 = vweird.f32 %v694_v9 }
  0xd3   :  { %vm358_vm6 = vmor %vm356_vm5, %vm357_vm4  ;;  %v696_v36 = vpop.eup %695 }
  0xd4   :  { %v344_v18 = vsel %vm343_vm2, %v692_v63, %v340_v11  ;;  %v353_v19 = vsub.f32 1.0, %v352_v16  ;;  %v385_v37 = vmul.f32 128.0, %v696_v36  ;;  %vm389_vm8 = vweird.f32 %v696_v36 }
  0xd5   :  { %v349_v20 = vsel %vm346_vm3, %v348_v17, %v344_v18 }
  0xd6   :  { %v895_v23 = vmul.f32 %v349_v20, %v851_v5  ;;  %v354_v24 = vmul.f32 %v694_v9, %v353_v19  ;;  %378 = vadd.xlane.f32.xlu1 %v892_v10  ;;  %v386_v38 = vsub.f32 1.0, %v385_v37 }
  0xd8   :  { %v355_v25 = vadd.f32 %v694_v9, %v354_v24  ;;  %380 = vadd.xlane.f32.xlu2 %v895_v23  ;;  %409 = vadd.xlane.f32.xlu0 %v400_v56  ;;  %v401_v31 = vmul.f32 %v895_v23, %v895_v23  ;;  %v387_v39 = vmul.f32 %v696_v36, %v386_v38 }
  0xda   :  { %v359_v27 = vsel %vm358_vm6, %v694_v9, %v355_v25  ;;  %v388_v40 = vadd.f32 %v696_v36, %v387_v39 }
  0xdb   :  { %v364_v29 = vsel %vm361_vm7, %v363_v26, %v359_v27 }
  0xdc   :  { %v902_v5 = vmul.f32 %v364_v29, %v866_v30  ;;  %v909_v41 = vsel %vm389_vm8, %v696_v36, %v388_v40 }
  0xde   :  { %411 = vadd.xlane.f32.xlu1 %v401_v31  ;;  %v402_v34 = vmul.f32 %v902_v5, %v902_v5 }
  0xe0   :  { %382 = vadd.xlane.f32.xlu2 %v902_v5 }
  0xe8   :  { %413 = vadd.xlane.f32.xlu2 %v402_v34 }
 0x133   :  { %v373_v30 = vpop.xlane.xlu0 %372 }
 0x134   :  { %v912_v42 = vmul.f32 %v909_v41, %v373_v30  ;;  %v946_v30 = vld [vmem:[%s1009_s3] ss:$0 sm:$0xff] }
 0x136   :  { %v421_v49 = vmul.f32 %v912_v42, %v912_v42 }
 0x139   :  { %v377_v43 = vpop.xlane.xlu1 %376 }
 0x13a   :  { %v915_v44 = vmul.f32 %v909_v41, %v377_v43 }
 0x13b   :  { %v408_v45 = vpop.xlane.xlu2 %407  ;;  %v404_v47 = vpop.xlane.xlu0 %403 }
 0x13c   :  { %v423_v51 = vmul.f32 %v915_v44, %v915_v44  ;;  %v417_v52 = vmul.f32 %v408_v45, %v909_v41  ;;  %v415_v53 = vmul.f32 %v404_v47, %v909_v41  ;;  %v441_v40 = vsub.f32 %v875_v48, %v915_v44  ;;  %v954_v48 = vld [vmem:[%s1010_s4] ss:$0 sm:$0xff] }
 0x13d   :  { %v439_v47 = vsub.f32 %v864_v28, %v912_v42 }
 0x13e   :  { %v429_v54 = vsub.f32 %v417_v52, %v423_v51  ;;  %v427_v55 = vsub.f32 %v415_v53, %v421_v49 }
 0x140   :  { %v435_v57 = vmax.f32 %v429_v54, 0.0  ;;  %v433_v58 = vmax.f32 %v427_v55, 0.0 }
 0x141   :  { %v406_v59 = vpop.xlane.xlu1 %405 }
 0x142   :  { %v447_v60 = vadd.f32 1e-05, %v435_v57  ;;  %v445_v61 = vadd.f32 1e-05, %v433_v58  ;;  %v416_v0 = vmul.f32 %v406_v59, %v909_v41 }
 0x143   :  { %v375_v62 = vpop.xlane.xlu0 %374 }
 0x144   :  { %697 = vrsqrt.f32 %v447_v60  ;;  %v924_v63 = vmul.f32 %v909_v41, %v375_v62  ;;  %vm477_vm11 = vweird.f32 %v447_v60  ;;  %vm457_vm13 = vweird.f32 %v445_v61 }
 0x145   :  { %699 = vrsqrt.f32 %v445_v61 }
 0x146   :  { %v422_v1 = vmul.f32 %v924_v63, %v924_v63 }
 0x148   :  { %v428_v50 = vsub.f32 %v416_v0, %v422_v1 }
 0x149   :  { %v379_v2 = vpop.xlane.xlu1 %378 }
 0x14a   :  { %v698_v3 = vpop.eup %697  ;;  %v434_v4 = vmax.f32 %v428_v50, 0.0  ;;  %v930_v6 = vmul.f32 %v909_v41, %v379_v2 }
 0x14b   :  { %v700_v7 = vpop.eup %699  ;;  %v472_v8 = vmul.f32 %v698_v3, %v447_v60  ;;  %v381_v9 = vpop.xlane.xlu2 %380  ;;  %vm478_vm9 = vweird.f32 %v698_v3 }
 0x14c   :  { %v410_v11 = vpop.xlane.xlu0 %409  ;;  %v452_v16 = vmul.f32 %v700_v7, %v445_v61  ;;  %v446_v17 = vadd.f32 1e-05, %v434_v4  ;;  %v424_v19 = vmul.f32 %v930_v6, %v930_v6  ;;  %v936_v22 = vmul.f32 %v909_v41, %v381_v9  ;;  %vm479_vm12 = vmor %vm477_vm11, %vm478_vm9 }
 0x14d   :  { %v473_v18 = vmul.f32 %v698_v3, %v472_v8  ;;  %v418_v20 = vmul.f32 %v410_v11, %v909_v41  ;;  %vm458_vm10 = vweird.f32 %v700_v7  ;;  %v440_v9 = vsub.f32 %v883_v46, %v924_v63 }
 0x14e   :  { %v453_v21 = vmul.f32 %v700_v7, %v452_v16  ;;  %701 = vrsqrt.f32 %v446_v17  ;;  %v425_v34 = vmul.f32 %v936_v22, %v936_v22  ;;  %vm459_vm14 = vmor %vm457_vm13, %vm458_vm10  ;;  %vm467_vm0 = vweird.f32 %v446_v17 }
 0x14f   :  { %v474_v24 = vmul.f32 0.5, %v473_v18  ;;  %v430_v56 = vsub.f32 %v418_v20, %v424_v19 }
 0x150   :  { %v454_v25 = vmul.f32 0.5, %v453_v21 }
 0x151   :  { %v475_v26 = vsub.f32 1.5, %v474_v24  ;;  %v436_v27 = vmax.f32 %v430_v56, 0.0  ;;  %v412_v29 = vpop.xlane.xlu1 %411 }
 0x152   :  { %v455_v31 = vsub.f32 1.5, %v454_v25  ;;  %v419_v35 = vmul.f32 %v412_v29, %v909_v41  ;;  %v442_v25 = vsub.f32 %v892_v10, %v930_v6  ;;  %v443_v10 = vsub.f32 %v895_v23, %v936_v22 }
 0x153   :  { %v476_v36 = vmul.f32 %v698_v3, %v475_v26  ;;  %v448_v37 = vadd.f32 1e-05, %v436_v27  ;;  %v383_v38 = vpop.xlane.xlu2 %382 }
 0x154   :  { %v702_v39 = vpop.eup %701  ;;  %v456_v43 = vmul.f32 %v700_v7, %v455_v31  ;;  %v431_v45 = vsub.f32 %v419_v35, %v425_v34  ;;  %v958_v58 = vmul.f32 %v909_v41, %v383_v38 }
 0x155   :  { %v480_v49 = vsel %vm479_vm12, %v698_v3, %v476_v36  ;;  %v462_v51 = vmul.f32 %v702_v39, %v446_v17  ;;  %703 = vrsqrt.f32 %v448_v37  ;;  %vm468_vm15 = vweird.f32 %v702_v39 }
 0x156   :  { %v513_v44 = vmul.f32 %v480_v49, %v441_v40  ;;  %v460_v52 = vsel %vm459_vm14, %v700_v7, %v456_v43  ;;  %v437_v55 = vmax.f32 %v431_v45, 0.0  ;;  %v426_v3 = vmul.f32 %v958_v58, %v958_v58  ;;  %vm469_vm1 = vmor %vm467_vm0, %vm468_vm15 }
 0x157   :  { %v511_v53 = vmul.f32 %v460_v52, %v439_v47  ;;  %v463_v54 = vmul.f32 %v702_v39, %v462_v51  ;;  %vm487_vm3 = vweird.f32 %v448_v37 }
 0x158   :  { %v522_v57 = vmul.f32 %v946_v30, %v513_v44  ;;  %v449_v59 = vadd.f32 1e-05, %v437_v55 }
 0x159   :  { %v520_v28 = vmul.f32 %v946_v30, %v511_v53  ;;  %v464_v42 = vmul.f32 0.5, %v463_v54 }
 0x15a   :  { %v531_v60 = vadd.f32 %v954_v48, %v522_v57  ;;  %705 = vrsqrt.f32 %v449_v59  ;;  %vm497_vm6 = vweird.f32 %v449_v59 }
 0x15b   :  { %v704_v61 = vpop.eup %703  ;;  %v529_v62 = vadd.f32 %v954_v48, %v520_v28  ;;  %v465_v0 = vsub.f32 1.5, %v464_v42  ;;  %v414_v1 = vpop.xlane.xlu2 %413 }
 0x15c   :  { %v537_v50 = vadd.f32 %v531_v60, %v789_v14  ;;  %v482_v2 = vmul.f32 %v704_v61, %v448_v37  ;;  %v420_v4 = vmul.f32 %v414_v1, %v909_v41  ;;  %vm488_vm2 = vweird.f32 %v704_v61 }
 0x15d   :  { %v535_v7 = vadd.f32 %v529_v62, %v779_v12  ;;  %v466_v8 = vmul.f32 %v702_v39, %v465_v0  ;;  %vm489_vm4 = vmor %vm487_vm3, %vm488_vm2 }
 0x15e   :  { %543 = vst [vmem:[%s1011_s5 + $0x10] sm:$0xff] %v537_v50  ;;  %v483_v11 = vmul.f32 %v704_v61, %v482_v2  ;;  %v432_v14 = vsub.f32 %v420_v4, %v426_v3 }
 0x15f   :  { %541 = vst [vmem:[%s1011_s5] sm:$0xff] %v535_v7  ;;  %v470_v16 = vsel %vm469_vm1, %v702_v39, %v466_v8 }
 0x160   :  { %v512_v41 = vmul.f32 %v470_v16, %v440_v9  ;;  %v484_v18 = vmul.f32 0.5, %v483_v11  ;;  %v438_v12 = vmax.f32 %v432_v14, 0.0  ;;  %v706_v19 = vpop.eup %705 }
 0x161   :  { %v492_v21 = vmul.f32 %v706_v19, %v449_v59  ;;  %vm498_vm5 = vweird.f32 %v706_v19 }
 0x162   :  { %v521_v17 = vmul.f32 %v946_v30, %v512_v41  ;;  %v485_v20 = vsub.f32 1.5, %v484_v18  ;;  %v450_v24 = vadd.f32 1e-05, %v438_v12  ;;  %vm499_vm7 = vmor %vm497_vm6, %vm498_vm5 }
 0x163   :  { %v493_v56 = vmul.f32 %v706_v19, %v492_v21 }
 0x164   :  { %v530_v46 = vadd.f32 %v954_v48, %v521_v17  ;;  %v486_v63 = vmul.f32 %v704_v61, %v485_v20  ;;  %707 = vrsqrt.f32 %v450_v24  ;;  %vm507_vm9 = vweird.f32 %v450_v24 }
 0x165   :  { %v494_v29 = vmul.f32 0.5, %v493_v56 }
 0x166   :  { %v536_v26 = vadd.f32 %v530_v46, %v784_v13  ;;  %v490_v27 = vsel %vm489_vm4, %v704_v61, %v486_v63 }
 0x167   :  { %v514_v31 = vmul.f32 %v490_v27, %v442_v25  ;;  %v495_v34 = vsub.f32 1.5, %v494_v29 }
 0x168   :  { %542 = vst [vmem:[%s1011_s5 + $0x8] sm:$0xff] %v536_v26 }
 0x169   :  { %v523_v35 = vmul.f32 %v946_v30, %v514_v31  ;;  %v496_v36 = vmul.f32 %v706_v19, %v495_v34 }
 0x16a   :  { %v708_v37 = vpop.eup %707 }
 0x16b   :  { %v532_v6 = vadd.f32 %v954_v48, %v523_v35  ;;  %v500_v13 = vsel %vm499_vm7, %v706_v19, %v496_v36  ;;  %v502_v38 = vmul.f32 %v708_v37, %v450_v24  ;;  %vm508_vm8 = vweird.f32 %v708_v37 }
 0x16c   :  { %v515_v40 = vmul.f32 %v500_v13, %v443_v10  ;;  %vm509_vm10 = vmor %vm507_vm9, %vm508_vm8 }
 0x16d   :  { %v538_v39 = vadd.f32 %v532_v6, %v794_v15  ;;  %v503_v43 = vmul.f32 %v708_v37, %v502_v38  ;;  %v444_v15 = vsub.f32 %v902_v5, %v958_v58 }
 0x16e   :  { %v524_v45 = vmul.f32 %v946_v30, %v515_v40 }
 0x16f   :  { %544 = vst [vmem:[%s1011_s5 + $0x18] sm:$0xff] %v538_v39  ;;  %v504_v47 = vmul.f32 0.5, %v503_v43 }
 0x170   :  { %v533_v49 = vadd.f32 %v954_v48, %v524_v45 }
 0x171   :  { %v505_v51 = vsub.f32 1.5, %v504_v47 }
 0x172   :  { %v539_v23 = vadd.f32 %v533_v49, %v825_v32 }
 0x173   :  { %v506_v22 = vmul.f32 %v708_v37, %v505_v51 }
 0x174   :  { %545 = vst [vmem:[%s1011_s5 + $0x20] sm:$0xff] %v539_v23 }
 0x175   :  { %v510_v44 = vsel %vm509_vm10, %v708_v37, %v506_v22 }
 0x176   :  { %v516_v52 = vmul.f32 %v510_v44, %v444_v15 }
 0x178   :  { %v525_v53 = vmul.f32 %v946_v30, %v516_v52 }
 0x17a   :  { %v534_v54 = vadd.f32 %v954_v48, %v525_v53 }
 0x17c   :  { %v540_v55 = vadd.f32 %v534_v54, %v830_v33 }
 0x17e   :  { %546 = vst [vmem:[%s1011_s5 + $0x28] sm:$0xff] %v540_v55 }

// kernel: lora_n2e2n_forward.5
= control target key start
LH: loop header
LB: loop body
LE: loop exit
PB: predicated region body
PF: predicated region fallthrough
CT: control target
= control target key end

     0   :  { %s802_s1 = inlined_call_operand.vmem [shape: bf16[128,128], index: 1, kind: input, shape index: {}]   ;;  %s803_s0 = inlined_call_operand.vmem [shape: f32[48,128], index: 0, kind: input, shape index: {}, may-alias: {0,4}]   ;;  %s804_s2 = inlined_call_operand.vmem [shape: f32[1,128], index: 2, kind: input, shape index: {}]   ;;  %s805_s3 = inlined_call_operand.vmem [shape: f32[1,128], index: 3, kind: input, shape index: {}]   ;;  %s806_s4 = inlined_call_operand.vmem [shape: f32[48,128], index: 4, kind: output, shape index: {}, may-alias: {0,4}]  }
   0x1   :  { %v460_v0 = vld [vmem:[%s802_s1 + $0x38] sm:$0xff]  ;;  %v459_v1 = vld [vmem:[%s802_s1 + $0x30] sm:$0xff]  ;;  %v458_v2 = vld [vmem:[%s802_s1 + $0x28] sm:$0xff] }
   0x2   :  { %90 = vmatpush.bf16.msra.mxu0 %v460_v0  ;;  %461 = vmatpush.bf16.msra.mxu1 %v460_v0  ;;  %v457_v3 = vld [vmem:[%s802_s1 + $0x20] sm:$0xff]  ;;  %v456_v4 = vld [vmem:[%s802_s1 + $0x18] sm:$0xff]  ;;  %v455_v5 = vld [vmem:[%s802_s1 + $0x10] sm:$0xff] }
   0x3   :  { %462 = vmatpush.bf16.msra.mxu2 %v460_v0  ;;  %v454_v6 = vld [vmem:[%s802_s1 + $0x8] sm:$0xff]  ;;  %v453_v7 = vld [vmem:[%s802_s1] sm:$0xff]  ;;  %v581_v10 = vld [vmem:[%s803_s0 + $0x10] sm:$0xff] }
   0x4   :  { %v571_v8 = vld [vmem:[%s803_s0] sm:$0xff]  ;;  %v576_v9 = vld [vmem:[%s803_s0 + $0x8] sm:$0xff]  ;;  %v586_v11 = vld [vmem:[%s803_s0 + $0x18] sm:$0xff] }
   0x5   :  { %v591_v12 = vld [vmem:[%s803_s0 + $0x20] sm:$0xff]  ;;  %v596_v13 = vld [vmem:[%s803_s0 + $0x28] sm:$0xff]  ;;  %v23_v14 = vpack.c.bf16 %v576_v9, %v571_v8  ;;  %v24_v15 = vpack.c.bf16 %v586_v11, %v581_v10 }
   0x6   :  { %91 = vmatpush.bf16.msra.mxu0 %v459_v1  ;;  %463 = vmatpush.bf16.msra.mxu1 %v459_v1  ;;  %v25_v16 = vpack.c.bf16 %v596_v13, %v591_v12 }
   0x7   :  { %464 = vmatpush.bf16.msra.mxu2 %v459_v1 }
   0xa   :  { %92 = vmatpush.bf16.msra.mxu0 %v458_v2  ;;  %465 = vmatpush.bf16.msra.mxu1 %v458_v2 }
   0xb   :  { %466 = vmatpush.bf16.msra.mxu2 %v458_v2 }
   0xe   :  { %93 = vmatpush.bf16.msra.mxu0 %v457_v3  ;;  %467 = vmatpush.bf16.msra.mxu1 %v457_v3 }
   0xf   :  { %468 = vmatpush.bf16.msra.mxu2 %v457_v3 }
  0x12   :  { %94 = vmatpush.bf16.msra.mxu0 %v456_v4  ;;  %469 = vmatpush.bf16.msra.mxu1 %v456_v4 }
  0x13   :  { %470 = vmatpush.bf16.msra.mxu2 %v456_v4 }
  0x16   :  { %95 = vmatpush.bf16.msra.mxu0 %v455_v5  ;;  %471 = vmatpush.bf16.msra.mxu1 %v455_v5 }
  0x17   :  { %472 = vmatpush.bf16.msra.mxu2 %v455_v5 }
  0x1a   :  { %96 = vmatpush.bf16.msra.mxu0 %v454_v6  ;;  %473 = vmatpush.bf16.msra.mxu1 %v454_v6 }
  0x1b   :  { %474 = vmatpush.bf16.msra.mxu2 %v454_v6 }
  0x1e   :  { %97 = vmatpush.bf16.msra.mxu0 %v453_v7  ;;  %475 = vmatpush.bf16.msra.mxu1 %v453_v7 }
  0x1f   :  { %476 = vmatpush.bf16.msra.mxu2 %v453_v7 }
  0x21   :  { %98 = vmatmul.bf16.vlgmr.msra.gmra.mxu0 %v23_v14  ;;  %103 = vmatmul.bf16.vlgmr.msra.gmra.mxu1 %v24_v15 }
  0x22   :  { %108 = vmatmul.bf16.vlgmr.msra.gmra.mxu2 %v25_v16 }
  0x9e   :  { %v604_v17 = vpop.f32.mrf.mxu0  ;;  %v606_v18 = vpop.f32.mrf.mxu1 }
  0x9f   :  { %v447_v19 = vmul.f32 -1.442695, %v604_v17  ;;  %v449_v20 = vmul.f32 -1.442695, %v606_v18 }
  0xa1   :  { %480 = vpow2.f32 %v447_v19 }
  0xa2   :  { %482 = vpow2.f32 %v449_v20 }
  0xa5   :  { %v610_v21 = vpop.f32.mrf.mxu2 }
  0xa6   :  { %v451_v22 = vmul.f32 -1.442695, %v610_v21  ;;  %v613_v23 = vpop.f32.mrf.mxu0  ;;  %v615_v24 = vpop.f32.mrf.mxu1 }
  0xa7   :  { %v481_v25 = vpop.eup %480  ;;  %v448_v26 = vmul.f32 -1.442695, %v613_v23  ;;  %v450_v29 = vmul.f32 -1.442695, %v615_v24 }
  0xa8   :  { %v483_v27 = vpop.eup %482  ;;  %v134_v28 = vadd.f32 1.0, %v481_v25  ;;  %484 = vpow2.f32 %v451_v22 }
  0xa9   :  { %v136_v30 = vadd.f32 1.0, %v483_v27  ;;  %486 = vpow2.f32 %v448_v26 }
  0xaa   :  { %488 = vrcp.f32 %v134_v28  ;;  %v149_v43 = vand.u32 2147483647, %v134_v28  ;;  %v151_v44 = vand.u32 2147483648, %v134_v28  ;;  %vm145_vm2 = vweird.f32 %v134_v28 }
  0xab   :  { %490 = vrcp.f32 %v136_v30  ;;  %v179_v46 = vand.u32 2147483647, %v136_v30  ;;  %v181_v48 = vand.u32 2147483648, %v136_v30  ;;  %vm175_vm3 = vweird.f32 %v136_v30 }
  0xac   :  { %492 = vpow2.f32 %v450_v29  ;;  %vm150_vm5 = vcmp.eq.f32.partialorder %v149_v43, 8.507059e+37  ;;  %v152_v54 = vor.u32 1.1754944e-38, %v151_v44 }
  0xad   :  { %v619_v31 = vpop.f32.mrf.mxu2  ;;  %vm180_vm7 = vcmp.eq.f32.partialorder %v179_v46, 8.507059e+37  ;;  %v182_v59 = vor.u32 1.1754944e-38, %v181_v48 }
  0xae   :  { %v485_v32 = vpop.eup %484  ;;  %v452_v33 = vmul.f32 -1.442695, %v619_v31 }
  0xaf   :  { %v487_v34 = vpop.eup %486  ;;  %v622_v35 = vadd.f32 1.0, %v485_v32 }
  0xb0   :  { %v489_v36 = vpop.eup %488  ;;  %v624_v37 = vadd.f32 1.0, %v487_v34  ;;  %494 = vpow2.f32 %v452_v33 }
  0xb1   :  { %v491_v38 = vpop.eup %490  ;;  %v141_v39 = vmul.f32 %v489_v36, %v134_v28  ;;  %496 = vrcp.f32 %v622_v35  ;;  %vm146_vm0 = vweird.f32 %v489_v36  ;;  %v211_v14 = vand.u32 2147483648, %v622_v35 }
  0xb2   :  { %v493_v40 = vpop.eup %492  ;;  %v171_v41 = vmul.f32 %v491_v38, %v136_v30  ;;  %498 = vrcp.f32 %v624_v37  ;;  %vm176_vm1 = vweird.f32 %v491_v38  ;;  %vm147_vm4 = vmor %vm145_vm2, %vm146_vm0  ;;  %vm205_vm9 = vweird.f32 %v622_v35 }
  0xb3   :  { %v142_v42 = vsub.f32 1.0, %v141_v39  ;;  %v628_v49 = vadd.f32 1.0, %v493_v40  ;;  %vm177_vm6 = vmor %vm175_vm3, %vm176_vm1  ;;  %v164_v20 = vand.u32 2147483647, %v624_v37  ;;  %v166_v22 = vand.u32 2147483648, %v624_v37 }
  0xb4   :  { %v172_v45 = vsub.f32 1.0, %v171_v41  ;;  %v212_v30 = vor.u32 1.1754944e-38, %v211_v14  ;;  %vm160_vm14 = vweird.f32 %v624_v37 }
  0xb5   :  { %v143_v47 = vmul.f32 %v489_v36, %v142_v42  ;;  %500 = vrcp.f32 %v628_v49  ;;  %v196_v28 = vand.u32 2147483648, %v628_v49  ;;  %v194_v33 = vand.u32 2147483647, %v628_v49 }
  0xb6   :  { %v495_v50 = vpop.eup %494  ;;  %v173_v51 = vmul.f32 %v491_v38, %v172_v45  ;;  %vm674_vm0 = vcmp.eq.f32.partialorder %v164_v20, 8.507059e+37  ;;  %vm190_vm1 = vweird.f32 %v628_v49  ;;  %v167_v41 = vor.u32 1.1754944e-38, %v166_v22 }
  0xb7   :  { %v497_v52 = vpop.eup %496  ;;  %v144_v53 = vadd.f32 %v489_v36, %v143_v47  ;;  %v634_v60 = vadd.f32 1.0, %v495_v50  ;;  %v197_v42 = vor.u32 1.1754944e-38, %v196_v28  ;;  %vm195_vm3 = vcmp.eq.f32.partialorder %v194_v33, 8.507059e+37 }
  0xb8   :  { %v174_v55 = vadd.f32 %v491_v38, %v173_v51  ;;  %v201_v56 = vmul.f32 %v497_v52, %v622_v35  ;;  %v632_v57 = vpop.eup %498  ;;  %vm206_vm8 = vweird.f32 %v497_v52 }
  0xb9   :  { %v148_v58 = vsel %vm147_vm4, %v489_v36, %v144_v53  ;;  %v156_v0 = vmul.f32 %v632_v57, %v624_v37  ;;  %502 = vrcp.f32 %v634_v60  ;;  %vm654_vm10 = vmor %vm205_vm9, %vm206_vm8  ;;  %vm161_vm11 = vweird.f32 %v632_v57 }
  0xba   :  { %v153_v61 = vsel %vm150_vm5, %v152_v54, %v148_v58  ;;  %v178_v62 = vsel %vm177_vm6, %v491_v38, %v174_v55  ;;  %v202_v63 = vsub.f32 1.0, %v201_v56  ;;  %vm670_vm15 = vmor %vm160_vm14, %vm161_vm11  ;;  %v224_v45 = vand.u32 2147483647, %v634_v60 }
  0xbb   :  { %v639_v1 = vmul.f32 %v153_v61, %v604_v17  ;;  %v183_v2 = vsel %vm180_vm7, %v182_v59, %v178_v62  ;;  %v157_v5 = vsub.f32 1.0, %v156_v0  ;;  %v501_v6 = vpop.eup %500  ;;  %v209_v17 = vand.u32 2147483647, %v622_v35 }
  0xbc   :  { %v642_v3 = vmul.f32 %v183_v2, %v606_v18  ;;  %v203_v4 = vmul.f32 %v497_v52, %v202_v63  ;;  %v186_v16 = vmul.f32 %v501_v6, %v628_v49  ;;  %vm191_vm12 = vweird.f32 %v501_v6 }
  0xbd   :  { %236 = vadd.xlane.f32.xlu0 %v639_v1  ;;  %v158_v15 = vmul.f32 %v632_v57, %v157_v5  ;;  %vm210_vm13 = vcmp.eq.f32.partialorder %v209_v17, 8.507059e+37  ;;  %v261_v35 = vmul.f32 %v639_v1, %v639_v1  ;;  %vm192_vm2 = vmor %vm190_vm1, %vm191_vm12  ;;  %v226_v46 = vand.u32 2147483648, %v634_v60 }
  0xbe   :  { %v204_v7 = vadd.f32 %v497_v52, %v203_v4  ;;  %240 = vadd.xlane.f32.xlu1 %v642_v3  ;;  %v263_v18 = vmul.f32 %v642_v3, %v642_v3  ;;  %v187_v25 = vsub.f32 1.0, %v186_v16  ;;  %vm220_vm5 = vweird.f32 %v634_v60 }
  0xbf   :  { %v159_v27 = vadd.f32 %v632_v57, %v158_v15  ;;  %v503_v29 = vpop.eup %502  ;;  %v227_v53 = vor.u32 1.1754944e-38, %v226_v46  ;;  %vm225_vm7 = vcmp.eq.f32.partialorder %v224_v45, 8.507059e+37 }
  0xc0   :  { %v208_v26 = vsel %vm654_vm10, %v497_v52, %v204_v7  ;;  %271 = vadd.xlane.f32.xlu2 %v263_v18  ;;  %v188_v32 = vmul.f32 %v501_v6, %v187_v25  ;;  %v216_v34 = vmul.f32 %v503_v29, %v634_v60  ;;  %vm221_vm4 = vweird.f32 %v503_v29 }
  0xc1   :  { %v213_v36 = vsel %vm210_vm13, %v212_v30, %v208_v26  ;;  %v163_v37 = vsel %vm670_vm15, %v632_v57, %v159_v27  ;;  %vm222_vm6 = vmor %vm220_vm5, %vm221_vm4 }
  0xc2   :  { %v189_v40 = vadd.f32 %v501_v6, %v188_v32  ;;  %v217_v43 = vsub.f32 1.0, %v216_v34  ;;  %v685_v47 = vmul.f32 %v213_v36, %v610_v21  ;;  %v168_v50 = vsel %vm674_vm0, %v167_v41, %v163_v37 }
  0xc3   :  { %v696_v21 = vmul.f32 %v168_v50, %v613_v23 }
  0xc4   :  { %v193_v44 = vsel %vm192_vm2, %v501_v6, %v189_v40  ;;  %v218_v49 = vmul.f32 %v503_v29, %v217_v43  ;;  %v265_v58 = vmul.f32 %v685_v47, %v685_v47 }
  0xc5   :  { %267 = vadd.xlane.f32.xlu0 %v261_v35  ;;  %v198_v48 = vsel %vm195_vm3, %v197_v42, %v193_v44  ;;  %v262_v56 = vmul.f32 %v696_v21, %v696_v21 }
  0xc6   :  { %v690_v51 = vmul.f32 %v198_v48, %v615_v24  ;;  %v219_v52 = vadd.f32 %v503_v29, %v218_v49 }
  0xc8   :  { %244 = vadd.xlane.f32.xlu2 %v685_v47  ;;  %242 = vadd.xlane.f32.xlu1 %v690_v51  ;;  %v223_v54 = vsel %vm222_vm6, %v503_v29, %v219_v52  ;;  %v264_v57 = vmul.f32 %v690_v51, %v690_v51 }
  0xc9   :  { %v228_v55 = vsel %vm225_vm7, %v227_v53, %v223_v54 }
  0xca   :  { %v700_v24 = vmul.f32 %v228_v55, %v619_v31  ;;  %v518_v31 = vmov 128.0  }
  0xcb   :  { %504 = vrcp.f32 %v518_v31 }
  0xcc   :  { %v266_v23 = vmul.f32 %v700_v24, %v700_v24 }
  0xcd   :  { %238 = vadd.xlane.f32.xlu0 %v696_v21 }
  0xd0   :  { %246 = vadd.xlane.f32.xlu2 %v700_v24  ;;  %269 = vadd.xlane.f32.xlu1 %v262_v56 }
  0xd1   :  { %v505_v59 = vpop.eup %504 }
  0xd2   :  { %v249_v60 = vmul.f32 128.0, %v505_v59  ;;  %vm253_vm8 = vweird.f32 %v505_v59 }
  0xd4   :  { %v250_v61 = vsub.f32 1.0, %v249_v60 }
  0xd5   :  { %273 = vadd.xlane.f32.xlu0 %v264_v57 }
  0xd6   :  { %v251_v62 = vmul.f32 %v505_v59, %v250_v61 }
  0xd8   :  { %277 = vadd.xlane.f32.xlu2 %v266_v23  ;;  %275 = vadd.xlane.f32.xlu1 %v265_v58  ;;  %v252_v63 = vadd.f32 %v505_v59, %v251_v62 }
  0xda   :  { %v711_v0 = vsel %vm253_vm8, %v505_v59, %v252_v63  ;;  %v743_v59 = vld [vmem:[%s804_s2] ss:$0 sm:$0xff] }
 0x130   :  { %v237_v2 = vpop.xlane.xlu0 %236 }
 0x131   :  { %v241_v4 = vpop.xlane.xlu1 %240  ;;  %v715_v14 = vmul.f32 %v711_v0, %v237_v2 }
 0x132   :  { %v257_v5 = vmul.f32 %v711_v0, %v241_v4 }
 0x133   :  { %v272_v7 = vpop.xlane.xlu2 %271  ;;  %v285_v18 = vmul.f32 %v715_v14, %v715_v14 }
 0x134   :  { %v287_v6 = vmul.f32 %v257_v5, %v257_v5  ;;  %v281_v15 = vmul.f32 %v272_v7, %v711_v0  ;;  %v305_v55 = vsub.f32 %v642_v3, %v257_v5  ;;  %v753_v5 = vld [vmem:[%s805_s3] ss:$0 sm:$0xff] }
 0x136   :  { %v293_v16 = vsub.f32 %v281_v15, %v287_v6 }
 0x138   :  { %v268_v17 = vpop.xlane.xlu0 %267  ;;  %v299_v19 = vmax.f32 %v293_v16, 0.0 }
 0x139   :  { %v279_v20 = vmul.f32 %v268_v17, %v711_v0 }
 0x13a   :  { %v311_v22 = vadd.f32 1e-05, %v299_v19 }
 0x13b   :  { %v291_v25 = vsub.f32 %v279_v20, %v285_v18  ;;  %v245_v26 = vpop.xlane.xlu2 %244  ;;  %v243_v27 = vpop.xlane.xlu1 %242  ;;  %v303_v18 = vsub.f32 %v639_v1, %v715_v14 }
 0x13c   :  { %506 = vrsqrt.f32 %v311_v22  ;;  %v727_v38 = vmul.f32 %v711_v0, %v243_v27  ;;  %v733_v48 = vmul.f32 %v711_v0, %v245_v26  ;;  %vm341_vm10 = vweird.f32 %v311_v22 }
 0x13d   :  { %v297_v28 = vmax.f32 %v291_v25, 0.0 }
 0x13e   :  { %v288_v46 = vmul.f32 %v727_v38, %v727_v38  ;;  %v289_v60 = vmul.f32 %v733_v48, %v733_v48 }
 0x13f   :  { %v309_v29 = vadd.f32 1e-05, %v297_v28 }
 0x140   :  { %v239_v30 = vpop.xlane.xlu0 %238 }
 0x141   :  { %508 = vrsqrt.f32 %v309_v29  ;;  %v722_v32 = vmul.f32 %v711_v0, %v239_v30  ;;  %vm321_vm13 = vweird.f32 %v309_v29 }
 0x142   :  { %v507_v33 = vpop.eup %506 }
 0x143   :  { %v336_v34 = vmul.f32 %v507_v33, %v311_v22  ;;  %v286_v35 = vmul.f32 %v722_v32, %v722_v32  ;;  %v247_v36 = vpop.xlane.xlu2 %246  ;;  %v270_v39 = vpop.xlane.xlu1 %269  ;;  %vm342_vm9 = vweird.f32 %v507_v33 }
 0x144   :  { %v280_v37 = vmul.f32 %v270_v39, %v711_v0  ;;  %v736_v49 = vmul.f32 %v711_v0, %v247_v36  ;;  %vm343_vm11 = vmor %vm341_vm10, %vm342_vm9 }
 0x145   :  { %v337_v40 = vmul.f32 %v507_v33, %v336_v34 }
 0x146   :  { %v292_v44 = vsub.f32 %v280_v37, %v286_v35  ;;  %v290_v61 = vmul.f32 %v736_v49, %v736_v49 }
 0x147   :  { %v509_v41 = vpop.eup %508  ;;  %v338_v42 = vmul.f32 0.5, %v337_v40 }
 0x148   :  { %v316_v43 = vmul.f32 %v509_v41, %v309_v29  ;;  %v274_v45 = vpop.xlane.xlu0 %273  ;;  %v298_v54 = vmax.f32 %v292_v44, 0.0  ;;  %vm322_vm12 = vweird.f32 %v509_v41 }
 0x149   :  { %v282_v50 = vmul.f32 %v274_v45, %v711_v0  ;;  %v339_v52 = vsub.f32 1.5, %v338_v42  ;;  %vm323_vm14 = vmor %vm321_vm13, %vm322_vm12 }
 0x14a   :  { %v317_v53 = vmul.f32 %v509_v41, %v316_v43  ;;  %v310_v58 = vadd.f32 1e-05, %v298_v54 }
 0x14b   :  { %v294_v56 = vsub.f32 %v282_v50, %v288_v46  ;;  %v340_v57 = vmul.f32 %v507_v33, %v339_v52  ;;  %v278_v31 = vpop.xlane.xlu2 %277  ;;  %v276_v3 = vpop.xlane.xlu1 %275  ;;  %v304_v50 = vsub.f32 %v696_v21, %v722_v32 }
 0x14c   :  { %v318_v23 = vmul.f32 0.5, %v317_v53  ;;  %v284_v63 = vmul.f32 %v278_v31, %v711_v0  ;;  %510 = vrsqrt.f32 %v310_v58  ;;  %v283_v15 = vmul.f32 %v276_v3, %v711_v0 }
 0x14d   :  { %v300_v62 = vmax.f32 %v294_v56, 0.0  ;;  %v344_v2 = vsel %vm343_vm11, %v507_v33, %v340_v57  ;;  %vm331_vm0 = vweird.f32 %v310_v58  ;;  %v306_v57 = vsub.f32 %v690_v51, %v727_v38 }
 0x14e   :  { %v319_v4 = vsub.f32 1.5, %v318_v23  ;;  %v377_v6 = vmul.f32 %v344_v2, %v305_v55  ;;  %v296_v16 = vsub.f32 %v284_v63, %v290_v61  ;;  %v295_v20 = vsub.f32 %v283_v15, %v289_v60 }
 0x14f   :  { %v312_v7 = vadd.f32 1e-05, %v300_v62  ;;  %v308_v38 = vsub.f32 %v700_v24, %v736_v49  ;;  %v307_v15 = vsub.f32 %v685_v47, %v733_v48 }
 0x150   :  { %v320_v17 = vmul.f32 %v509_v41, %v319_v4  ;;  %v386_v19 = vmul.f32 %v743_v59, %v377_v6  ;;  %v302_v25 = vmax.f32 %v296_v16, 0.0  ;;  %v301_v28 = vmax.f32 %v295_v20, 0.0 }
 0x151   :  { %512 = vrsqrt.f32 %v312_v7  ;;  %vm351_vm3 = vweird.f32 %v312_v7 }
 0x152   :  { %v324_v22 = vsel %vm323_vm14, %v509_v41, %v320_v17  ;;  %v395_v26 = vadd.f32 %v753_v5, %v386_v19  ;;  %v511_v30 = vpop.eup %510  ;;  %v314_v33 = vadd.f32 1e-05, %v302_v25  ;;  %v313_v35 = vadd.f32 1e-05, %v301_v28 }
 0x153   :  { %v375_v27 = vmul.f32 %v324_v22, %v303_v18  ;;  %v326_v34 = vmul.f32 %v511_v30, %v310_v58  ;;  %vm332_vm15 = vweird.f32 %v511_v30 }
 0x154   :  { %v401_v0 = vadd.f32 %v395_v26, %v581_v10  ;;  %514 = vrsqrt.f32 %v314_v33  ;;  %vm333_vm1 = vmor %vm331_vm0, %vm332_vm15  ;;  %vm371_vm6 = vweird.f32 %v314_v33  ;;  %vm361_vm9 = vweird.f32 %v313_v35 }
 0x155   :  { %v384_v29 = vmul.f32 %v743_v59, %v375_v27  ;;  %v327_v36 = vmul.f32 %v511_v30, %v326_v34  ;;  %516 = vrsqrt.f32 %v313_v35 }
 0x156   :  { %407 = vst [vmem:[%s806_s4 + $0x10] sm:$0xff] %v401_v0 }
 0x157   :  { %v513_v1 = vpop.eup %512  ;;  %v393_v14 = vadd.f32 %v753_v5, %v384_v29  ;;  %v328_v37 = vmul.f32 0.5, %v327_v36 }
 0x158   :  { %v346_v39 = vmul.f32 %v513_v1, %v312_v7  ;;  %vm352_vm2 = vweird.f32 %v513_v1 }
 0x159   :  { %v399_v40 = vadd.f32 %v393_v14, %v571_v8  ;;  %v329_v10 = vsub.f32 1.5, %v328_v37  ;;  %vm353_vm4 = vmor %vm351_vm3, %vm352_vm2 }
 0x15a   :  { %v347_v41 = vmul.f32 %v513_v1, %v346_v39  ;;  %v515_v42 = vpop.eup %514 }
 0x15b   :  { %405 = vst [vmem:[%s806_s4] sm:$0xff] %v399_v40  ;;  %v330_v44 = vmul.f32 %v511_v30, %v329_v10  ;;  %v366_v45 = vmul.f32 %v515_v42, %v314_v33  ;;  %v517_v46 = vpop.eup %516  ;;  %vm372_vm5 = vweird.f32 %v515_v42 }
 0x15c   :  { %v348_v43 = vmul.f32 0.5, %v347_v41  ;;  %v356_v53 = vmul.f32 %v517_v46, %v313_v35  ;;  %vm362_vm7 = vweird.f32 %v517_v46  ;;  %vm373_vm8 = vmor %vm371_vm6, %vm372_vm5 }
 0x15d   :  { %v334_v8 = vsel %vm333_vm1, %v511_v30, %v330_v44  ;;  %v367_v54 = vmul.f32 %v515_v42, %v366_v45  ;;  %vm363_vm10 = vmor %vm361_vm9, %vm362_vm7 }
 0x15e   :  { %v349_v52 = vsub.f32 1.5, %v348_v43  ;;  %v376_v55 = vmul.f32 %v334_v8, %v304_v50  ;;  %v357_v23 = vmul.f32 %v517_v46, %v356_v53 }
 0x15f   :  { %v368_v58 = vmul.f32 0.5, %v367_v54 }
 0x160   :  { %v350_v56 = vmul.f32 %v513_v1, %v349_v52  ;;  %v385_v31 = vmul.f32 %v743_v59, %v376_v55  ;;  %v358_v21 = vmul.f32 0.5, %v357_v23 }
 0x161   :  { %v369_v32 = vsub.f32 1.5, %v368_v58 }
 0x162   :  { %v354_v60 = vsel %vm353_vm4, %v513_v1, %v350_v56  ;;  %v394_v62 = vadd.f32 %v753_v5, %v385_v31  ;;  %v359_v63 = vsub.f32 1.5, %v358_v21 }
 0x163   :  { %v378_v61 = vmul.f32 %v354_v60, %v306_v57  ;;  %v370_v2 = vmul.f32 %v515_v42, %v369_v32 }
 0x164   :  { %v400_v51 = vadd.f32 %v394_v62, %v576_v9  ;;  %v360_v6 = vmul.f32 %v517_v46, %v359_v63 }
 0x165   :  { %v387_v3 = vmul.f32 %v743_v59, %v378_v61  ;;  %v374_v7 = vsel %vm373_vm8, %v515_v42, %v370_v2 }
 0x166   :  { %406 = vst [vmem:[%s806_s4 + $0x8] sm:$0xff] %v400_v51  ;;  %v380_v16 = vmul.f32 %v374_v7, %v308_v38  ;;  %v364_v17 = vsel %vm363_vm10, %v517_v46, %v360_v6 }
 0x167   :  { %v396_v4 = vadd.f32 %v753_v5, %v387_v3  ;;  %v379_v18 = vmul.f32 %v364_v17, %v307_v15 }
 0x168   :  { %v389_v24 = vmul.f32 %v743_v59, %v380_v16 }
 0x169   :  { %v402_v9 = vadd.f32 %v396_v4, %v586_v11  ;;  %v388_v49 = vmul.f32 %v743_v59, %v379_v18 }
 0x16a   :  { %v398_v47 = vadd.f32 %v753_v5, %v389_v24 }
 0x16b   :  { %408 = vst [vmem:[%s806_s4 + $0x18] sm:$0xff] %v402_v9  ;;  %v397_v48 = vadd.f32 %v753_v5, %v388_v49 }
 0x16c   :  { %v404_v19 = vadd.f32 %v398_v47, %v596_v13 }
 0x16d   :  { %v403_v20 = vadd.f32 %v397_v48, %v591_v12 }
 0x16e   :  { %410 = vst [vmem:[%s806_s4 + $0x28] sm:$0xff] %v404_v19 }
 0x16f   :  { %409 = vst [vmem:[%s806_s4 + $0x20] sm:$0xff] %v403_v20 }

</bundles_post_ra>
